<compile_context>
chip_gen: v7x
topology: tpu7x:2x2x1
jax: 0.10.0
libtpu: 0.0.40
codegen_flags: <defaults>
</compile_context>

<pallas_src>
import jax
import jax.numpy as jnp
from jax import lax
from jax.experimental import pallas as pl
from jax.experimental.pallas import tpu as pltpu

EMBED = 16          # "embedding = 16"  (不能修改)
ATTN_EXACT = 4      # self.attn_exact
FAULT_TYPE = 6      # self.fault_type
FFN_HIDDEN = 32     # stand-in encoder FFN width
LN_EPS = 1e-5
_PAD8 = 8                                   # sublane tile; attn / fault blocks padded to 8 rows
_HEAD_ROWS = _PAD8 + ATTN_EXACT * _PAD8     # 40 = [attn logits | pad | 4 x 8-row padded f-values]


def _generalization_kernel(x_ref, wqkv_ref, wmisc_ref, w2_ref, colp_ref, o_ref):
    """All tensors are (feature rows on sublanes, batch TB on lanes) -> lane-dense."""
    SE, TB = x_ref.shape                  # SE = S * EMBED (token-major flattened features)
    E = EMBED
    S = SE // E
    n_qkv = E + 2 * SE                    # rows of the fused Q(CLS)|K|V projection
    # column-parameter slab offsets (all multiples of 16 -> sublane-tile aligned)
    o_ln1g = n_qkv
    o_ln1b = o_ln1g + E
    o_b1 = o_ln1b + E
    o_b2 = o_b1 + FFN_HIDDEN
    o_ln2g = o_b2 + E
    o_ln2b = o_ln2g + E
    o_bh = o_ln2b + E

    x = x_ref[...]                        # (SE, TB)
    colp = colp_ref[...]                  # (n_qkv + 152, 1): per-row params, lane-broadcast

    # ---------- stand-in Encoder (single transformer block), CLS-query only ----------
    # Fused Q(CLS) | K(all S tokens) | V(all S tokens): one lane-dense MXU matmul
    # (block-diagonal weight built wrapper-side; the zero blocks cost nothing extra).
    qkv = (jnp.dot(wqkv_ref[...], x, preferred_element_type=jnp.float32)
           + colp[:n_qkv, :])             # (n_qkv, TB)
    q = qkv[:E, :]                        # (E, TB)   CLS-row query
    x0 = x[:E, :]                         # (E, TB)   CLS-row input features

    scale = 1.0 / (E ** 0.5)
    # scores[s, b] = <q[:, b], k_s[:, b]> * scale, kept as a dense (S, TB) tensor.
    scores = jnp.concatenate(
        [jnp.sum(q * qkv[E + s * E:E + (s + 1) * E, :], axis=0, keepdims=True)
         for s in range(S)], axis=0) * scale                      # (S, TB)
    m = jnp.max(scores, axis=0, keepdims=True)
    ex = jnp.exp(scores - m)
    p = ex * pl.reciprocal(jnp.sum(ex, axis=0, keepdims=True), approx=True)

    vb = E + SE
    ctx = p[0:1, :] * qkv[vb:vb + E, :]
    for s in range(1, S):
        ctx = ctx + p[s:s + 1, :] * qkv[vb + s * E:vb + (s + 1) * E, :]   # (E, TB)

    h = x0 + ctx                          # residual + LayerNorm over the E=16 sublanes
    mu = jnp.mean(h, axis=0, keepdims=True)
    var = jnp.mean((h - mu) * (h - mu), axis=0, keepdims=True)
    h = (h - mu) * lax.rsqrt(var + LN_EPS) * colp[o_ln1g:o_ln1b, :] + colp[o_ln1b:o_b1, :]

    w1t = wmisc_ref[:FFN_HIDDEN, :]       # (32, 16)
    whead = wmisc_ref[FFN_HIDDEN:, :]     # (40, 16) fused attn-Linear + f{loc}-Linear
    ff = jnp.maximum(
        jnp.dot(w1t, h, preferred_element_type=jnp.float32) + colp[o_b1:o_b2, :], 0.0)
    ff = jnp.dot(w2_ref[...], ff, preferred_element_type=jnp.float32) + colp[o_b2:o_ln2g, :]
    h2 = h + ff
    mu2 = jnp.mean(h2, axis=0, keepdims=True)
    var2 = jnp.mean((h2 - mu2) * (h2 - mu2), axis=0, keepdims=True)
    cls = ((h2 - mu2) * lax.rsqrt(var2 + LN_EPS) * colp[o_ln2g:o_ln2b, :]
           + colp[o_ln2b:o_bh, :])        # (E, TB) = encoder(x)[0][:, 0, :].T

    # ---------- classification head (selected `loc` branch), one fused matmul -------
    head = (jnp.dot(whead, cls, preferred_element_type=jnp.float32)
            + colp[o_bh:, :])             # (40, TB)
    logits = head[:ATTN_EXACT, :]         # (4, TB)  attn Linear output
    am = jnp.max(logits, axis=0, keepdims=True)          # softmax over dim=1 (the A axis)
    ae = jnp.exp(logits - am)
    attn = ae * pl.reciprocal(jnp.sum(ae, axis=0, keepdims=True), approx=True)
    # nn.Dropout(0.1) -> identity in eval mode.

    # out[f, b] = sum_a attn[a, b] * (cls[:, b] @ Wf[:, a, :] + bf[a, :])[f]
    out = attn[0:1, :] * head[_PAD8:2 * _PAD8, :]
    for a in range(1, ATTN_EXACT):
        lo = _PAD8 + a * _PAD8
        out = out + attn[a:a + 1, :] * head[lo:lo + _PAD8, :]
    o_ref[...] = out                      # (8, TB); rows >= FAULT_TYPE are exact zeros


def _round_up(n, m):
    return -(-n // m) * m


def _num_tensorcores():
    """Best-effort TensorCores-per-device (v4 megacore / v7x -> 2; v5e / v6e -> 1)."""
    try:
        kind = jax.devices()[0].device_kind.lower()
    except Exception:
        return 1
    return 2 if ("v7" in kind or "v4" in kind) else 1


def _choose_tb(b128, n_cores):
    """Batch tile (lane dim of every block): 128-aligned, large (amortize ~0.35us/step),
    and only split into >= n_cores grid steps when the chip actually has > 1 TC."""
    tb = min(2048, b128)
    if n_cores > 1 and b128 >= n_cores * 128:
        tb = min(tb, (b128 // (n_cores * 128)) * 128)
    return tb


def _pack(params, loc, seq_len):
    """Repack weights into transposed, lane/sublane-aligned slabs:
       w_qkv  (E + 2*S*E, S*E): fused Q(CLS)|K|V, block-diagonal over tokens
       w_misc (FFN_HIDDEN + 40, E): W1^T stacked on the fused (padded) head weight
       w2_t   (E, FFN_HIDDEN)
       colp   (E + 2*S*E + 152, 1): every bias / LayerNorm parameter as one column."""
    enc = params["encoder"]
    S, E = seq_len, EMBED
    f32 = jnp.float32

    def bdiag(w_t):                                   # (E, E) -> (S*E, S*E)
        return jnp.einsum("st,ij->sitj", jnp.eye(S, dtype=f32), w_t).reshape(S * E, S * E)

    q_rows = jnp.pad(enc["wq"].T, ((0, 0), (0, (S - 1) * E)))       # CLS-token columns only
    w_qkv = jnp.concatenate([q_rows, bdiag(enc["wk"].T), bdiag(enc["wv"].T)], axis=0)

    wf_t = params[f"f{loc + 1}_w"].T.reshape(ATTN_EXACT, FAULT_TYPE, E)
    wf_pad = jnp.pad(wf_t, ((0, 0), (0, _PAD8 - FAULT_TYPE), (0, 0))
                     ).reshape(ATTN_EXACT * _PAD8, E)
    w_head = jnp.concatenate(
        [params["attn_w"].T, jnp.zeros((_PAD8 - ATTN_EXACT, E), f32), wf_pad], axis=0)
    w_misc = jnp.concatenate([enc["w1"].T, w_head], axis=0)         # (72, 16)
    w2_t = enc["w2"].T                                              # (16, 32)

    def col(v):
        return v.reshape(-1, 1).astype(f32)

    b_head = jnp.concatenate(
        [col(params["attn_b"]), jnp.zeros((_PAD8 - ATTN_EXACT, 1), f32),
         col(jnp.pad(params[f"f{loc + 1}_b"].reshape(ATTN_EXACT, FAULT_TYPE),
                     ((0, 0), (0, _PAD8 - FAULT_TYPE))))], axis=0)   # (40, 1)
    colp = jnp.concatenate(
        [col(enc["bq"]), jnp.tile(col(enc["bk"]), (S, 1)), jnp.tile(col(enc["bv"]), (S, 1)),
         col(enc["ln1_g"]), col(enc["ln1_b"]), col(enc["b1"]), col(enc["b2"]),
         col(enc["ln2_g"]), col(enc["ln2_b"]), b_head], axis=0)      # (E + 2*S*E + 152, 1)
    return w_qkv, w_misc, w2_t, colp


def generalization_forward(x, params, loc):
    """Returns (f1_out, f2_out, f3_out); only the `loc` entry is non-None."""
    B, S, E = x.shape
    assert E == EMBED
    w_qkv, w_misc, w2_t, colp = _pack(params, loc, S)

    n_cores = _num_tensorcores()
    tb = _choose_tb(_round_up(B, 128), n_cores)
    b_pad = _round_up(B, tb)
    n_steps = b_pad // tb

    # Lane-dense input: (B, S, E) -> (S*E, b_pad): batch on the 128-lane axis, so the
    # x block, every intermediate and the output block carry zero lane padding.
    x2d = x.reshape(B, S * E)
    if b_pad != B:
        # Zero batch rows are benign: LayerNorm eps keeps them finite and they are dropped.
        x2d = jnp.pad(x2d, ((0, b_pad - B), (0, 0)))
    x_t = x2d.T                                                      # (S*E, b_pad)

    cost = pl.CostEstimate(
        flops=int(2 * b_pad * (w_qkv.shape[0] * w_qkv.shape[1]
                               + (FFN_HIDDEN + _HEAD_ROWS) * EMBED + EMBED * FFN_HIDDEN)),
        transcendentals=int(b_pad * (S + ATTN_EXACT + 4)),
        bytes_accessed=int(4 * (x_t.size + _PAD8 * b_pad + w_qkv.size + w_misc.size
                                + w2_t.size + colp.size)))

    out = pl.pallas_call(
        _generalization_kernel,
        out_shape=jax.ShapeDtypeStruct((_PAD8, b_pad), jnp.float32),
        grid=(n_steps,),
        in_specs=[
            pl.BlockSpec((S * E, tb), lambda i: (0, i)),     # x_t: batch tiles on lanes
            pl.BlockSpec(w_qkv.shape, lambda i: (0, 0)),
            pl.BlockSpec(w_misc.shape, lambda i: (0, 0)),
            pl.BlockSpec(w2_t.shape, lambda i: (0, 0)),
            pl.BlockSpec(colp.shape, lambda i: (0, 0)),
        ],
        out_specs=pl.BlockSpec((_PAD8, tb), lambda i: (0, i)),   # lane-dense (8, tb) stores
        compiler_params=pltpu.CompilerParams(
            dimension_semantics=("parallel",),
            vmem_limit_bytes=32 * 1024 * 1024),
        cost_estimate=cost,
    )(x_t, w_qkv, w_misc, w2_t, colp)

    f_out = out[:FAULT_TYPE, :B].T                                   # (B, 6)
    outs = [None, None, None]
    outs[loc] = f_out
    return tuple(outs)


def _reference_forward(x, params, loc):
    """Pure-JAX reference (full-sequence encoder, then [CLS] readout)."""
    enc = params["encoder"]
    B, S, E = x.shape
    q = x @ enc["wq"] + enc["bq"]
    k = x @ enc["wk"] + enc["bk"]
    v = x @ enc["wv"] + enc["bv"]
    scores = jnp.einsum("bqe,bke->bqk", q, k) / (E ** 0.5)
    p = jax.nn.softmax(scores, axis=-1)
    ctx = jnp.einsum("bqk,bke->bqe", p, v)

    def ln(z, g, be):
        mu = z.mean(-1, keepdims=True)
        var = ((z - mu) ** 2).mean(-1, keepdims=True)
        return (z - mu) / jnp.sqrt(var + LN_EPS) * g + be

    h = ln(x + ctx, enc["ln1_g"], enc["ln1_b"])
    ff = jnp.maximum(h @ enc["w1"] + enc["b1"], 0.0) @ enc["w2"] + enc["b2"]
    h2 = ln(h + ff, enc["ln2_g"], enc["ln2_b"])
    cls = h2[:, 0, :]
    attn = jax.nn.softmax(cls @ params["attn_w"] + params["attn_b"], axis=1)
    fvals = (cls @ params[f"f{loc + 1}_w"] + params[f"f{loc + 1}_b"]
             ).reshape(B, ATTN_EXACT, FAULT_TYPE)
    return jnp.einsum("ba,baf->bf", attn, fvals)


def init_params(key):
    ks = list(jax.random.split(key, 24))

    def lin(k, fi, fo):
        return (jax.random.normal(k, (fi, fo), jnp.float32) / jnp.sqrt(fi)).astype(jnp.float32)

    def bias(k, fo):
        return (jax.random.normal(k, (1, fo), jnp.float32) * 0.01).astype(jnp.float32)

    encoder = {
        "wq": lin(ks[0], EMBED, EMBED), "bq": bias(ks[1], EMBED),
        "wk": lin(ks[2], EMBED, EMBED), "bk": bias(ks[3], EMBED),
        "wv": lin(ks[4], EMBED, EMBED), "bv": bias(ks[5], EMBED),
        "ln1_g": jnp.ones((1, EMBED), jnp.float32),
        "ln1_b": jnp.zeros((1, EMBED), jnp.float32),
        "w1": lin(ks[6], EMBED, FFN_HIDDEN), "b1": bias(ks[7], FFN_HIDDEN),
        "w2": lin(ks[8], FFN_HIDDEN, EMBED), "b2": bias(ks[9], EMBED),
        "ln2_g": jnp.ones((1, EMBED), jnp.float32),
        "ln2_b": jnp.zeros((1, EMBED), jnp.float32),
    }

    params = {"encoder": encoder,
              "attn_w": lin(ks[10], EMBED, ATTN_EXACT),
              "attn_b": bias(ks[11], ATTN_EXACT)}

    # f{i}_layer: Linear(E, A*F).  Column order o = a*F + j matches .view(-1, A, F).
    for i in range(3):
        params[f"f{i + 1}_w"] = lin(ks[12 + 2 * i], EMBED, ATTN_EXACT * FAULT_TYPE)
        params[f"f{i + 1}_b"] = bias(ks[13 + 2 * i], ATTN_EXACT * FAULT_TYPE)
    return params


if __name__ == "__main__":
    key = jax.random.PRNGKey(0)
    kx, kp = jax.random.split(key)

    B, S = 2, 8
    x = jax.random.normal(kx, (B, S, EMBED), jnp.float32)
    params = init_params(kp)

    # loc = 0 -> only f1_out is produced (f2_out, f3_out are None), as in PyTorch.
    f1_out, f2_out, f3_out = generalization_forward(x, params, loc=0)
    jax.block_until_ready(f1_out)
    assert f1_out.shape == (B, FAULT_TYPE) and f2_out is None and f3_out is None

    with jax.default_matmul_precision("highest"):
        ref = _reference_forward(x, params, loc=0)
    err = float(jnp.max(jnp.abs(f1_out - ref)))
    assert err < 2e-2, f"kernel/reference mismatch: max abs err = {err}"

    print("KERNEL_OK")
</pallas_src>

<mosaic_0001>
module attributes {stable_mosaic.version = 11 : i64} {
  func.func @_generalization_kernel(%arg0: i32, %arg1: memref<128x128xf32, #tpu.memory_space<vmem>>, %arg2: memref<272x128xf32, #tpu.memory_space<vmem>>, %arg3: memref<72x16xf32, #tpu.memory_space<vmem>>, %arg4: memref<16x32xf32, #tpu.memory_space<vmem>>, %arg5: memref<424x1xf32, #tpu.memory_space<vmem>>, %arg6: memref<8x128xf32, #tpu.memory_space<vmem>>) attributes {dimension_semantics = [#tpu.dimension_semantics<parallel>], iteration_bounds = array<i64: 1>, scalar_prefetch = 0 : i64, scratch_operands = 0 : i64, tpu.core_type = #tpu.core_type<tc>, window_params = [{transform_indices = @transform_0, window_bounds = array<i64: 128, 128>}, {pipeline_mode = #tpu.pipeline_mode<synchronous>, transform_indices = @transform_1, window_bounds = array<i64: 272, 128>}, {pipeline_mode = #tpu.pipeline_mode<synchronous>, transform_indices = @transform_2, window_bounds = array<i64: 72, 16>}, {pipeline_mode = #tpu.pipeline_mode<synchronous>, transform_indices = @transform_3, window_bounds = array<i64: 16, 32>}, {pipeline_mode = #tpu.pipeline_mode<synchronous>, transform_indices = @transform_4, window_bounds = array<i64: 424, 1>}, {transform_indices = @transform_5, window_bounds = array<i64: 8, 128>}]} {
    %c0 = arith.constant 0 : index
    %c0_0 = arith.constant 0 : index
    %0 = vector.load %arg1[%c0, %c0_0] : memref<128x128xf32, #tpu.memory_space<vmem>>, vector<128x128xf32>
    %c0_1 = arith.constant 0 : index
    %c0_2 = arith.constant 0 : index
    %1 = vector.load %arg5[%c0_1, %c0_2] : memref<424x1xf32, #tpu.memory_space<vmem>>, vector<424x1xf32>
    %c0_3 = arith.constant 0 : index
    %c0_4 = arith.constant 0 : index
    %2 = vector.load %arg2[%c0_3, %c0_4] : memref<272x128xf32, #tpu.memory_space<vmem>>, vector<272x128xf32>
    %cst = arith.constant dense<0.000000e+00> : vector<272x128xf32>
    %3 = tpu.matmul %2, %0, %cst {dimension_numbers = #tpu.dot_dimension_numbers<[1], [0], [0], [1], [0, 0, 1, 1], [], []>} : vector<272x128xf32>, vector<128x128xf32>, vector<272x128xf32> -> vector<272x128xf32>
    %4 = vector.extract_strided_slice %1 {offsets = [0, 0], sizes = [272, 1], strides = [1, 1]} : vector<424x1xf32> to vector<272x1xf32>
    %5 = vector.broadcast %4 : vector<272x1xf32> to vector<272x128xf32>
    %6 = arith.addf %3, %5 : vector<272x128xf32>
    %7 = vector.extract_strided_slice %6 {offsets = [0, 0], sizes = [16, 128], strides = [1, 1]} : vector<272x128xf32> to vector<16x128xf32>
    %8 = vector.extract_strided_slice %0 {offsets = [0, 0], sizes = [16, 128], strides = [1, 1]} : vector<128x128xf32> to vector<16x128xf32>
    %9 = vector.extract_strided_slice %6 {offsets = [16, 0], sizes = [16, 128], strides = [1, 1]} : vector<272x128xf32> to vector<16x128xf32>
    %10 = arith.mulf %7, %9 : vector<16x128xf32>
    %cst_5 = arith.constant dense<0.000000e+00> : vector<128xf32>
    %11 = vector.multi_reduction <add>, %10, %cst_5 [0] : vector<16x128xf32> to vector<128xf32>
    %12 = vector.shape_cast %11 : vector<128xf32> to vector<1x128xf32>
    %13 = vector.extract_strided_slice %6 {offsets = [32, 0], sizes = [16, 128], strides = [1, 1]} : vector<272x128xf32> to vector<16x128xf32>
    %14 = arith.mulf %7, %13 : vector<16x128xf32>
    %cst_6 = arith.constant dense<0.000000e+00> : vector<128xf32>
    %15 = vector.multi_reduction <add>, %14, %cst_6 [0] : vector<16x128xf32> to vector<128xf32>
    %16 = vector.shape_cast %15 : vector<128xf32> to vector<1x128xf32>
    %17 = vector.extract_strided_slice %6 {offsets = [48, 0], sizes = [16, 128], strides = [1, 1]} : vector<272x128xf32> to vector<16x128xf32>
    %18 = arith.mulf %7, %17 : vector<16x128xf32>
    %cst_7 = arith.constant dense<0.000000e+00> : vector<128xf32>
    %19 = vector.multi_reduction <add>, %18, %cst_7 [0] : vector<16x128xf32> to vector<128xf32>
    %20 = vector.shape_cast %19 : vector<128xf32> to vector<1x128xf32>
    %21 = vector.extract_strided_slice %6 {offsets = [64, 0], sizes = [16, 128], strides = [1, 1]} : vector<272x128xf32> to vector<16x128xf32>
    %22 = arith.mulf %7, %21 : vector<16x128xf32>
    %cst_8 = arith.constant dense<0.000000e+00> : vector<128xf32>
    %23 = vector.multi_reduction <add>, %22, %cst_8 [0] : vector<16x128xf32> to vector<128xf32>
    %24 = vector.shape_cast %23 : vector<128xf32> to vector<1x128xf32>
    %25 = vector.extract_strided_slice %6 {offsets = [80, 0], sizes = [16, 128], strides = [1, 1]} : vector<272x128xf32> to vector<16x128xf32>
    %26 = arith.mulf %7, %25 : vector<16x128xf32>
    %cst_9 = arith.constant dense<0.000000e+00> : vector<128xf32>
    %27 = vector.multi_reduction <add>, %26, %cst_9 [0] : vector<16x128xf32> to vector<128xf32>
    %28 = vector.shape_cast %27 : vector<128xf32> to vector<1x128xf32>
    %29 = vector.extract_strided_slice %6 {offsets = [96, 0], sizes = [16, 128], strides = [1, 1]} : vector<272x128xf32> to vector<16x128xf32>
    %30 = arith.mulf %7, %29 : vector<16x128xf32>
    %cst_10 = arith.constant dense<0.000000e+00> : vector<128xf32>
    %31 = vector.multi_reduction <add>, %30, %cst_10 [0] : vector<16x128xf32> to vector<128xf32>
    %32 = vector.shape_cast %31 : vector<128xf32> to vector<1x128xf32>
    %33 = vector.extract_strided_slice %6 {offsets = [112, 0], sizes = [16, 128], strides = [1, 1]} : vector<272x128xf32> to vector<16x128xf32>
    %34 = arith.mulf %7, %33 : vector<16x128xf32>
    %cst_11 = arith.constant dense<0.000000e+00> : vector<128xf32>
    %35 = vector.multi_reduction <add>, %34, %cst_11 [0] : vector<16x128xf32> to vector<128xf32>
    %36 = vector.shape_cast %35 : vector<128xf32> to vector<1x128xf32>
    %37 = vector.extract_strided_slice %6 {offsets = [128, 0], sizes = [16, 128], strides = [1, 1]} : vector<272x128xf32> to vector<16x128xf32>
    %38 = arith.mulf %7, %37 : vector<16x128xf32>
    %cst_12 = arith.constant dense<0.000000e+00> : vector<128xf32>
    %39 = vector.multi_reduction <add>, %38, %cst_12 [0] : vector<16x128xf32> to vector<128xf32>
    %40 = vector.shape_cast %39 : vector<128xf32> to vector<1x128xf32>
    %41 = tpu.concatenate %12, %16, %20, %24, %28, %32, %36, %40 in 0 : vector<1x128xf32>, vector<1x128xf32>, vector<1x128xf32>, vector<1x128xf32>, vector<1x128xf32>, vector<1x128xf32>, vector<1x128xf32>, vector<1x128xf32> -> vector<8x128xf32>
    %cst_13 = arith.constant 2.500000e-01 : f32
    %42 = vector.broadcast %cst_13 : f32 to vector<8x128xf32>
    %43 = arith.mulf %41, %42 : vector<8x128xf32>
    %cst_14 = arith.constant dense<0xFF800000> : vector<128xf32>
    %44 = vector.multi_reduction <maximumf>, %43, %cst_14 [0] : vector<8x128xf32> to vector<128xf32>
    %45 = vector.shape_cast %44 : vector<128xf32> to vector<1x128xf32>
    %46 = vector.broadcast %45 : vector<1x128xf32> to vector<8x128xf32>
    %47 = arith.subf %43, %46 : vector<8x128xf32>
    %48 = math.exp %47 : vector<8x128xf32>
    %cst_15 = arith.constant dense<0.000000e+00> : vector<128xf32>
    %49 = vector.multi_reduction <add>, %48, %cst_15 [0] : vector<8x128xf32> to vector<128xf32>
    %50 = vector.shape_cast %49 : vector<128xf32> to vector<1x128xf32>
    %51 = tpu.reciprocal %50 {approx = true} : vector<1x128xf32> -> vector<1x128xf32>
    %52 = vector.broadcast %51 : vector<1x128xf32> to vector<8x128xf32>
    %53 = arith.mulf %48, %52 : vector<8x128xf32>
    %54 = vector.extract_strided_slice %53 {offsets = [0, 0], sizes = [1, 128], strides = [1, 1]} : vector<8x128xf32> to vector<1x128xf32>
    %55 = vector.extract_strided_slice %6 {offsets = [144, 0], sizes = [16, 128], strides = [1, 1]} : vector<272x128xf32> to vector<16x128xf32>
    %56 = vector.broadcast %54 : vector<1x128xf32> to vector<16x128xf32>
    %57 = arith.mulf %56, %55 : vector<16x128xf32>
    %58 = vector.extract_strided_slice %53 {offsets = [1, 0], sizes = [1, 128], strides = [1, 1]} : vector<8x128xf32> to vector<1x128xf32>
    %59 = vector.extract_strided_slice %6 {offsets = [160, 0], sizes = [16, 128], strides = [1, 1]} : vector<272x128xf32> to vector<16x128xf32>
    %60 = vector.broadcast %58 : vector<1x128xf32> to vector<16x128xf32>
    %61 = arith.mulf %60, %59 : vector<16x128xf32>
    %62 = arith.addf %57, %61 : vector<16x128xf32>
    %63 = vector.extract_strided_slice %53 {offsets = [2, 0], sizes = [1, 128], strides = [1, 1]} : vector<8x128xf32> to vector<1x128xf32>
    %64 = vector.extract_strided_slice %6 {offsets = [176, 0], sizes = [16, 128], strides = [1, 1]} : vector<272x128xf32> to vector<16x128xf32>
    %65 = vector.broadcast %63 : vector<1x128xf32> to vector<16x128xf32>
    %66 = arith.mulf %65, %64 : vector<16x128xf32>
    %67 = arith.addf %62, %66 : vector<16x128xf32>
    %68 = vector.extract_strided_slice %53 {offsets = [3, 0], sizes = [1, 128], strides = [1, 1]} : vector<8x128xf32> to vector<1x128xf32>
    %69 = vector.extract_strided_slice %6 {offsets = [192, 0], sizes = [16, 128], strides = [1, 1]} : vector<272x128xf32> to vector<16x128xf32>
    %70 = vector.broadcast %68 : vector<1x128xf32> to vector<16x128xf32>
    %71 = arith.mulf %70, %69 : vector<16x128xf32>
    %72 = arith.addf %67, %71 : vector<16x128xf32>
    %73 = vector.extract_strided_slice %53 {offsets = [4, 0], sizes = [1, 128], strides = [1, 1]} : vector<8x128xf32> to vector<1x128xf32>
    %74 = vector.extract_strided_slice %6 {offsets = [208, 0], sizes = [16, 128], strides = [1, 1]} : vector<272x128xf32> to vector<16x128xf32>
    %75 = vector.broadcast %73 : vector<1x128xf32> to vector<16x128xf32>
    %76 = arith.mulf %75, %74 : vector<16x128xf32>
    %77 = arith.addf %72, %76 : vector<16x128xf32>
    %78 = vector.extract_strided_slice %53 {offsets = [5, 0], sizes = [1, 128], strides = [1, 1]} : vector<8x128xf32> to vector<1x128xf32>
    %79 = vector.extract_strided_slice %6 {offsets = [224, 0], sizes = [16, 128], strides = [1, 1]} : vector<272x128xf32> to vector<16x128xf32>
    %80 = vector.broadcast %78 : vector<1x128xf32> to vector<16x128xf32>
    %81 = arith.mulf %80, %79 : vector<16x128xf32>
    %82 = arith.addf %77, %81 : vector<16x128xf32>
    %83 = vector.extract_strided_slice %53 {offsets = [6, 0], sizes = [1, 128], strides = [1, 1]} : vector<8x128xf32> to vector<1x128xf32>
    %84 = vector.extract_strided_slice %6 {offsets = [240, 0], sizes = [16, 128], strides = [1, 1]} : vector<272x128xf32> to vector<16x128xf32>
    %85 = vector.broadcast %83 : vector<1x128xf32> to vector<16x128xf32>
    %86 = arith.mulf %85, %84 : vector<16x128xf32>
    %87 = arith.addf %82, %86 : vector<16x128xf32>
    %88 = vector.extract_strided_slice %53 {offsets = [7, 0], sizes = [1, 128], strides = [1, 1]} : vector<8x128xf32> to vector<1x128xf32>
    %89 = vector.extract_strided_slice %6 {offsets = [256, 0], sizes = [16, 128], strides = [1, 1]} : vector<272x128xf32> to vector<16x128xf32>
    %90 = vector.broadcast %88 : vector<1x128xf32> to vector<16x128xf32>
    %91 = arith.mulf %90, %89 : vector<16x128xf32>
    %92 = arith.addf %87, %91 : vector<16x128xf32>
    %93 = arith.addf %8, %92 : vector<16x128xf32>
    %cst_16 = arith.constant dense<0.000000e+00> : vector<128xf32>
    %94 = vector.multi_reduction <add>, %93, %cst_16 [0] : vector<16x128xf32> to vector<128xf32>
    %95 = vector.shape_cast %94 : vector<128xf32> to vector<1x128xf32>
    %cst_17 = arith.constant 1.600000e+01 : f32
    %96 = vector.broadcast %cst_17 : f32 to vector<1x128xf32>
    %97 = arith.divf %95, %96 : vector<1x128xf32>
    %98 = vector.broadcast %97 : vector<1x128xf32> to vector<16x128xf32>
    %99 = arith.subf %93, %98 : vector<16x128xf32>
    %100 = vector.broadcast %97 : vector<1x128xf32> to vector<16x128xf32>
    %101 = arith.subf %93, %100 : vector<16x128xf32>
    %102 = arith.mulf %99, %101 : vector<16x128xf32>
    %cst_18 = arith.constant dense<0.000000e+00> : vector<128xf32>
    %103 = vector.multi_reduction <add>, %102, %cst_18 [0] : vector<16x128xf32> to vector<128xf32>
    %104 = vector.shape_cast %103 : vector<128xf32> to vector<1x128xf32>
    %cst_19 = arith.constant 1.600000e+01 : f32
    %105 = vector.broadcast %cst_19 : f32 to vector<1x128xf32>
    %106 = arith.divf %104, %105 : vector<1x128xf32>
    %107 = vector.broadcast %97 : vector<1x128xf32> to vector<16x128xf32>
    %108 = arith.subf %93, %107 : vector<16x128xf32>
    %cst_20 = arith.constant 9.99999974E-6 : f32
    %109 = vector.broadcast %cst_20 : f32 to vector<1x128xf32>
    %110 = arith.addf %106, %109 : vector<1x128xf32>
    %111 = math.rsqrt %110 : vector<1x128xf32>
    %112 = vector.broadcast %111 : vector<1x128xf32> to vector<16x128xf32>
    %113 = arith.mulf %108, %112 : vector<16x128xf32>
    %114 = vector.extract_strided_slice %1 {offsets = [272, 0], sizes = [16, 1], strides = [1, 1]} : vector<424x1xf32> to vector<16x1xf32>
    %115 = vector.broadcast %114 : vector<16x1xf32> to vector<16x128xf32>
    %116 = arith.mulf %113, %115 : vector<16x128xf32>
    %117 = vector.extract_strided_slice %1 {offsets = [288, 0], sizes = [16, 1], strides = [1, 1]} : vector<424x1xf32> to vector<16x1xf32>
    %118 = vector.broadcast %117 : vector<16x1xf32> to vector<16x128xf32>
    %119 = arith.addf %116, %118 : vector<16x128xf32>
    %c0_21 = arith.constant 0 : index
    %c0_22 = arith.constant 0 : index
    %120 = vector.load %arg3[%c0_21, %c0_22] : memref<72x16xf32, #tpu.memory_space<vmem>>, vector<32x16xf32>
    %c32 = arith.constant 32 : index
    %c0_23 = arith.constant 0 : index
    %121 = vector.load %arg3[%c32, %c0_23] : memref<72x16xf32, #tpu.memory_space<vmem>>, vector<40x16xf32>
    %cst_24 = arith.constant dense<0.000000e+00> : vector<32x128xf32>
    %122 = tpu.matmul %120, %119, %cst_24 {dimension_numbers = #tpu.dot_dimension_numbers<[1], [0], [0], [1], [0, 0, 1, 1], [], []>} : vector<32x16xf32>, vector<16x128xf32>, vector<32x128xf32> -> vector<32x128xf32>
    %123 = vector.extract_strided_slice %1 {offsets = [304, 0], sizes = [32, 1], strides = [1, 1]} : vector<424x1xf32> to vector<32x1xf32>
    %124 = vector.broadcast %123 : vector<32x1xf32> to vector<32x128xf32>
    %125 = arith.addf %122, %124 : vector<32x128xf32>
    %cst_25 = arith.constant 0.000000e+00 : f32
    %126 = vector.broadcast %cst_25 : f32 to vector<32x128xf32>
    %127 = arith.maximumf %125, %126 : vector<32x128xf32>
    %c0_26 = arith.constant 0 : index
    %c0_27 = arith.constant 0 : index
    %128 = vector.load %arg4[%c0_26, %c0_27] : memref<16x32xf32, #tpu.memory_space<vmem>>, vector<16x32xf32>
    %cst_28 = arith.constant dense<0.000000e+00> : vector<16x128xf32>
    %129 = tpu.matmul %128, %127, %cst_28 {dimension_numbers = #tpu.dot_dimension_numbers<[1], [0], [0], [1], [0, 0, 1, 1], [], []>} : vector<16x32xf32>, vector<32x128xf32>, vector<16x128xf32> -> vector<16x128xf32>
    %130 = vector.extract_strided_slice %1 {offsets = [336, 0], sizes = [16, 1], strides = [1, 1]} : vector<424x1xf32> to vector<16x1xf32>
    %131 = vector.broadcast %130 : vector<16x1xf32> to vector<16x128xf32>
    %132 = arith.addf %129, %131 : vector<16x128xf32>
    %133 = arith.addf %119, %132 : vector<16x128xf32>
    %cst_29 = arith.constant dense<0.000000e+00> : vector<128xf32>
    %134 = vector.multi_reduction <add>, %133, %cst_29 [0] : vector<16x128xf32> to vector<128xf32>
    %135 = vector.shape_cast %134 : vector<128xf32> to vector<1x128xf32>
    %cst_30 = arith.constant 1.600000e+01 : f32
    %136 = vector.broadcast %cst_30 : f32 to vector<1x128xf32>
    %137 = arith.divf %135, %136 : vector<1x128xf32>
    %138 = vector.broadcast %137 : vector<1x128xf32> to vector<16x128xf32>
    %139 = arith.subf %133, %138 : vector<16x128xf32>
    %140 = vector.broadcast %137 : vector<1x128xf32> to vector<16x128xf32>
    %141 = arith.subf %133, %140 : vector<16x128xf32>
    %142 = arith.mulf %139, %141 : vector<16x128xf32>
    %cst_31 = arith.constant dense<0.000000e+00> : vector<128xf32>
    %143 = vector.multi_reduction <add>, %142, %cst_31 [0] : vector<16x128xf32> to vector<128xf32>
    %144 = vector.shape_cast %143 : vector<128xf32> to vector<1x128xf32>
    %cst_32 = arith.constant 1.600000e+01 : f32
    %145 = vector.broadcast %cst_32 : f32 to vector<1x128xf32>
    %146 = arith.divf %144, %145 : vector<1x128xf32>
    %147 = vector.broadcast %137 : vector<1x128xf32> to vector<16x128xf32>
    %148 = arith.subf %133, %147 : vector<16x128xf32>
    %cst_33 = arith.constant 9.99999974E-6 : f32
    %149 = vector.broadcast %cst_33 : f32 to vector<1x128xf32>
    %150 = arith.addf %146, %149 : vector<1x128xf32>
    %151 = math.rsqrt %150 : vector<1x128xf32>
    %152 = vector.broadcast %151 : vector<1x128xf32> to vector<16x128xf32>
    %153 = arith.mulf %148, %152 : vector<16x128xf32>
    %154 = vector.extract_strided_slice %1 {offsets = [352, 0], sizes = [16, 1], strides = [1, 1]} : vector<424x1xf32> to vector<16x1xf32>
    %155 = vector.broadcast %154 : vector<16x1xf32> to vector<16x128xf32>
    %156 = arith.mulf %153, %155 : vector<16x128xf32>
    %157 = vector.extract_strided_slice %1 {offsets = [368, 0], sizes = [16, 1], strides = [1, 1]} : vector<424x1xf32> to vector<16x1xf32>
    %158 = vector.broadcast %157 : vector<16x1xf32> to vector<16x128xf32>
    %159 = arith.addf %156, %158 : vector<16x128xf32>
    %cst_34 = arith.constant dense<0.000000e+00> : vector<40x128xf32>
    %160 = tpu.matmul %121, %159, %cst_34 {dimension_numbers = #tpu.dot_dimension_numbers<[1], [0], [0], [1], [0, 0, 1, 1], [], []>} : vector<40x16xf32>, vector<16x128xf32>, vector<40x128xf32> -> vector<40x128xf32>
    %161 = vector.extract_strided_slice %1 {offsets = [384, 0], sizes = [40, 1], strides = [1, 1]} : vector<424x1xf32> to vector<40x1xf32>
    %162 = vector.broadcast %161 : vector<40x1xf32> to vector<40x128xf32>
    %163 = arith.addf %160, %162 : vector<40x128xf32>
    %164 = vector.extract_strided_slice %163 {offsets = [0, 0], sizes = [4, 128], strides = [1, 1]} : vector<40x128xf32> to vector<4x128xf32>
    %cst_35 = arith.constant dense<0xFF800000> : vector<128xf32>
    %165 = vector.multi_reduction <maximumf>, %164, %cst_35 [0] : vector<4x128xf32> to vector<128xf32>
    %166 = vector.shape_cast %165 : vector<128xf32> to vector<1x128xf32>
    %167 = vector.broadcast %166 : vector<1x128xf32> to vector<4x128xf32>
    %168 = arith.subf %164, %167 : vector<4x128xf32>
    %169 = math.exp %168 : vector<4x128xf32>
    %cst_36 = arith.constant dense<0.000000e+00> : vector<128xf32>
    %170 = vector.multi_reduction <add>, %169, %cst_36 [0] : vector<4x128xf32> to vector<128xf32>
    %171 = vector.shape_cast %170 : vector<128xf32> to vector<1x128xf32>
    %172 = tpu.reciprocal %171 {approx = true} : vector<1x128xf32> -> vector<1x128xf32>
    %173 = vector.broadcast %172 : vector<1x128xf32> to vector<4x128xf32>
    %174 = arith.mulf %169, %173 : vector<4x128xf32>
    %175 = vector.extract_strided_slice %174 {offsets = [0, 0], sizes = [1, 128], strides = [1, 1]} : vector<4x128xf32> to vector<1x128xf32>
    %176 = vector.extract_strided_slice %163 {offsets = [8, 0], sizes = [8, 128], strides = [1, 1]} : vector<40x128xf32> to vector<8x128xf32>
    %177 = vector.broadcast %175 : vector<1x128xf32> to vector<8x128xf32>
    %178 = arith.mulf %177, %176 : vector<8x128xf32>
    %179 = vector.extract_strided_slice %174 {offsets = [1, 0], sizes = [1, 128], strides = [1, 1]} : vector<4x128xf32> to vector<1x128xf32>
    %180 = vector.extract_strided_slice %163 {offsets = [16, 0], sizes = [8, 128], strides = [1, 1]} : vector<40x128xf32> to vector<8x128xf32>
    %181 = vector.broadcast %179 : vector<1x128xf32> to vector<8x128xf32>
    %182 = arith.mulf %181, %180 : vector<8x128xf32>
    %183 = arith.addf %178, %182 : vector<8x128xf32>
    %184 = vector.extract_strided_slice %174 {offsets = [2, 0], sizes = [1, 128], strides = [1, 1]} : vector<4x128xf32> to vector<1x128xf32>
    %185 = vector.extract_strided_slice %163 {offsets = [24, 0], sizes = [8, 128], strides = [1, 1]} : vector<40x128xf32> to vector<8x128xf32>
    %186 = vector.broadcast %184 : vector<1x128xf32> to vector<8x128xf32>
    %187 = arith.mulf %186, %185 : vector<8x128xf32>
    %188 = arith.addf %183, %187 : vector<8x128xf32>
    %189 = vector.extract_strided_slice %174 {offsets = [3, 0], sizes = [1, 128], strides = [1, 1]} : vector<4x128xf32> to vector<1x128xf32>
    %190 = vector.extract_strided_slice %163 {offsets = [32, 0], sizes = [8, 128], strides = [1, 1]} : vector<40x128xf32> to vector<8x128xf32>
    %191 = vector.broadcast %189 : vector<1x128xf32> to vector<8x128xf32>
    %192 = arith.mulf %191, %190 : vector<8x128xf32>
    %193 = arith.addf %188, %192 : vector<8x128xf32>
    %c0_37 = arith.constant 0 : index
    %c0_38 = arith.constant 0 : index
    %194 = vector.load %arg6[%c0_37, %c0_38] : memref<8x128xf32, #tpu.memory_space<vmem>>, vector<8x128xf32>
    tpu.vector_store %arg6[%c0_37, %c0_38], %193 {strides = array<i32>} : memref<8x128xf32, #tpu.memory_space<vmem>>, vector<8x128xf32>,
    return
  }
  func.func @transform_0(%arg0: i32) -> (i32, i32) {
    %c0_i32 = arith.constant 0 : i32
    %c0_i32_0 = arith.constant 0 : i32
    return %c0_i32, %arg0 : i32, i32
  }
  func.func @transform_1(%arg0: i32) -> (i32, i32) {
    %c0_i32 = arith.constant 0 : i32
    %c0_i32_0 = arith.constant 0 : i32
    %c0_i32_1 = arith.constant 0 : i32
    return %c0_i32, %c0_i32_0 : i32, i32
  }
  func.func @transform_2(%arg0: i32) -> (i32, i32) {
    %c0_i32 = arith.constant 0 : i32
    %c0_i32_0 = arith.constant 0 : i32
    %c0_i32_1 = arith.constant 0 : i32
    return %c0_i32, %c0_i32_0 : i32, i32
  }
  func.func @transform_3(%arg0: i32) -> (i32, i32) {
    %c0_i32 = arith.constant 0 : i32
    %c0_i32_0 = arith.constant 0 : i32
    %c0_i32_1 = arith.constant 0 : i32
    return %c0_i32, %c0_i32_0 : i32, i32
  }
  func.func @transform_4(%arg0: i32) -> (i32, i32) {
    %c0_i32 = arith.constant 0 : i32
    %c0_i32_0 = arith.constant 0 : i32
    %c0_i32_1 = arith.constant 0 : i32
    return %c0_i32, %c0_i32_0 : i32, i32
  }
  func.func @transform_5(%arg0: i32) -> (i32, i32) {
    %c0_i32 = arith.constant 0 : i32
    %c0_i32_0 = arith.constant 0 : i32
    return %c0_i32, %arg0 : i32, i32
  }
}

</mosaic_0001>

<bundles_post_ra>
// kernel: tpu_custom_call.1
= control target key start
LH: loop header
LB: loop body
LE: loop exit
PB: predicated region body
PF: predicated region fallthrough
CT: control target
= control target key end

     0   :  { %v1517_v5 = vmov 0   ;;  %s2027_s0 = inlined_call_operand.vmem [shape: f32[128,128], index: 0, kind: input, shape index: {}]   ;;  %s2028_s1 = inlined_call_operand.vmem [shape: f32[272,128], index: 1, kind: input, shape index: {}]   ;;  %s2029_s2 = inlined_call_operand.vmem [shape: f32[72,16], index: 2, kind: input, shape index: {}]   ;;  %s2030_s3 = inlined_call_operand.vmem [shape: f32[16,32], index: 3, kind: input, shape index: {}]   ;;  %s2031_s4 = inlined_call_operand.vmem [shape: f32[424,1], index: 4, kind: input, shape index: {}]   ;;  %s2032_s5 = inlined_call_operand.hbm [shape: f32[8,128], index: 5, kind: output, shape index: {}]  }
   0x1   :  { %v1555_v0 = vld [vmem:[%s2027_s0] sm:$0xff]  ;;  %v1560_v1 = vld [vmem:[%s2027_s0 + $0x8] sm:$0xff]  ;;  %v23_v2 = vld [vmem:[%s2027_s0 + $0x10] sm:$0xff]  ;;  %1479 = vset.pattern.permute.xlu0 %v1517_v5  ;;  %1480 = vset.pattern.permute.xlu1 %v1517_v5 }
   0x2   :  { %v1411_v3 = vpack.c.bf16 %v1560_v1, %v1555_v0  ;;  %v24_v4 = vld [vmem:[%s2027_s0 + $0x18] sm:$0xff]  ;;  %v25_v7 = vld [vmem:[%s2027_s0 + $0x20] sm:$0xff]  ;;  %v26_v8 = vld [vmem:[%s2027_s0 + $0x28] sm:$0xff] }
   0x3   :  { %v1415_v6 = vpack.c.bf16 %v24_v4, %v23_v2  ;;  %v37_v9 = vld [vmem:[%s2031_s4] sm:$0xff]  ;;  %v39_v10 = vld [vmem:[%s2031_s4 + $0x10] sm:$0xff]  ;;  %v1419_v11 = vpack.c.bf16 %v26_v8, %v25_v7  ;;  %v28_v13 = vld [vmem:[%s2027_s0 + $0x38] sm:$0xff] }
   0x4   :  { %1412 = vmatprep.subr.bf16.mxu0 %v1411_v3  ;;  %1458 = vmatprep.subr.bf16.mxu1 %v1411_v3  ;;  %v27_v12 = vld [vmem:[%s2027_s0 + $0x30] sm:$0xff]  ;;  %v38_v14 = vld [vmem:[%s2031_s4 + $0x8] sm:$0xff]  ;;  %v40_v15 = vld [vmem:[%s2031_s4 + $0x18] sm:$0xff] }
   0x5   :  { %1414 = vmatpush3.bf16.msra.mxu0 %v1411_v3  ;;  %1466 = vmatpush3.bf16.msra.mxu1 %v1411_v3  ;;  %v90_v16 = vld [vmem:[%s2028_s1] sm:$0xff]  ;;  %v116_v17 = vld [vmem:[%s2028_s1 + $0xd0] sm:$0xff]  ;;  %v1423_v18 = vpack.c.bf16 %v28_v13, %v27_v12  ;;  %v30_v20 = vld [vmem:[%s2027_s0 + $0x48] sm:$0xff] }
   0x6   :  { %1416 = vmatprep.subr.bf16.mxu0 %v1415_v6  ;;  %1459 = vmatprep.subr.bf16.mxu1 %v1415_v6  ;;  %v29_v19 = vld [vmem:[%s2027_s0 + $0x40] sm:$0xff]  ;;  %v42_v22 = vld [vmem:[%s2031_s4 + $0x28] sm:$0xff]  ;;  %v31_v24 = vld [vmem:[%s2027_s0 + $0x50] sm:$0xff] }
   0x7   :  { %126 = vperm.xlu0 %1479, %v37_v9   ;;  %136 = vperm.xlu1 %1480, %v39_v10   ;;  %v41_v21 = vld [vmem:[%s2031_s4 + $0x20] sm:$0xff]  ;;  %v1427_v23 = vpack.c.bf16 %v30_v20, %v29_v19  ;;  %v32_v25 = vld [vmem:[%s2027_s0 + $0x58] sm:$0xff]  ;;  %v43_v26 = vld [vmem:[%s2031_s4 + $0x30] sm:$0xff] }
   0x8   :  { %1320 = vmatprep.mubr.f32.mxu0 %v90_v16  ;;  %1359 = vmatprep.mubr.f32.mxu1 %v116_v17  ;;  %v44_v27 = vld [vmem:[%s2031_s4 + $0x38] sm:$0xff]  ;;  %v1431_v28 = vpack.c.bf16 %v32_v25, %v31_v24  ;;  %v33_v29 = vld [vmem:[%s2027_s0 + $0x60] sm:$0xff]  ;;  %v34_v30 = vld [vmem:[%s2027_s0 + $0x68] sm:$0xff] }
   0x9   :  { %1418 = vmatpush3.bf16.msra.mxu0 %v1415_v6  ;;  %1467 = vmatpush3.bf16.msra.mxu1 %v1415_v6  ;;  %v45_v31 = vld [vmem:[%s2031_s4 + $0x40] sm:$0xff]  ;;  %v46_v32 = vld [vmem:[%s2031_s4 + $0x48] sm:$0xff]  ;;  %v1435_v33 = vpack.c.bf16 %v34_v30, %v33_v29  ;;  %v35_v34 = vld [vmem:[%s2027_s0 + $0x70] sm:$0xff] }
   0xa   :  { %1420 = vmatprep.subr.bf16.mxu0 %v1419_v11  ;;  %1460 = vmatprep.subr.bf16.mxu1 %v1419_v11  ;;  %v36_v35 = vld [vmem:[%s2027_s0 + $0x78] sm:$0xff]  ;;  %v47_v36 = vld [vmem:[%s2031_s4 + $0x50] sm:$0xff]  ;;  %v49_v39 = vld [vmem:[%s2031_s4 + $0x60] sm:$0xff] }
   0xb   :  { %131 = vperm.xlu0 %1479, %v38_v14   ;;  %141 = vperm.xlu1 %1480, %v40_v15   ;;  %v48_v37 = vld [vmem:[%s2031_s4 + $0x58] sm:$0xff]  ;;  %v1439_v38 = vpack.c.bf16 %v36_v35, %v35_v34  ;;  %v50_v40 = vld [vmem:[%s2031_s4 + $0x68] sm:$0xff]  ;;  %v51_v41 = vld [vmem:[%s2031_s4 + $0x70] sm:$0xff] }
   0xc   :  { %v52_v42 = vld [vmem:[%s2031_s4 + $0x78] sm:$0xff]  ;;  %v91_v43 = vld [vmem:[%s2028_s1 + $0x8] sm:$0xff]  ;;  %v92_v45 = vld [vmem:[%s2028_s1 + $0x10] sm:$0xff] }
   0xd   :  { %1422 = vmatpush3.bf16.msra.mxu0 %v1419_v11  ;;  %1468 = vmatpush3.bf16.msra.mxu1 %v1419_v11  ;;  %v117_v44 = vld [vmem:[%s2028_s1 + $0xd8] sm:$0xff]  ;;  %v118_v46 = vld [vmem:[%s2028_s1 + $0xe0] sm:$0xff] }
   0xe   :  { %1424 = vmatprep.subr.bf16.mxu0 %v1423_v18  ;;  %1461 = vmatprep.subr.bf16.mxu1 %v1423_v18 }
   0xf   :  { %146 = vperm.xlu0 %1479, %v41_v21   ;;  %151 = vperm.xlu1 %1480, %v42_v22  }
  0x11   :  { %1426 = vmatpush3.bf16.msra.mxu0 %v1423_v18  ;;  %1469 = vmatpush3.bf16.msra.mxu1 %v1423_v18 }
  0x12   :  { %1428 = vmatprep.subr.bf16.mxu0 %v1427_v23  ;;  %1462 = vmatprep.subr.bf16.mxu1 %v1427_v23 }
  0x13   :  { %156 = vperm.xlu0 %1479, %v43_v26   ;;  %161 = vperm.xlu1 %1480, %v44_v27  }
  0x15   :  { %1430 = vmatpush3.bf16.msra.mxu0 %v1427_v23  ;;  %1470 = vmatpush3.bf16.msra.mxu1 %v1427_v23 }
  0x16   :  { %1432 = vmatprep.subr.bf16.mxu0 %v1431_v28  ;;  %1463 = vmatprep.subr.bf16.mxu1 %v1431_v28 }
  0x17   :  { %166 = vperm.xlu0 %1479, %v45_v31   ;;  %171 = vperm.xlu1 %1480, %v46_v32  }
  0x19   :  { %1434 = vmatpush3.bf16.msra.mxu0 %v1431_v28  ;;  %1471 = vmatpush3.bf16.msra.mxu1 %v1431_v28 }
  0x1a   :  { %1436 = vmatprep.subr.bf16.mxu0 %v1435_v33  ;;  %1464 = vmatprep.subr.bf16.mxu1 %v1435_v33 }
  0x1b   :  { %176 = vperm.xlu0 %1479, %v47_v36   ;;  %181 = vperm.xlu1 %1480, %v48_v37  }
  0x1d   :  { %1438 = vmatpush3.bf16.msra.mxu0 %v1435_v33  ;;  %1472 = vmatpush3.bf16.msra.mxu1 %v1435_v33 }
  0x1e   :  { %1440 = vmatprep.subr.bf16.mxu0 %v1439_v38  ;;  %1465 = vmatprep.subr.bf16.mxu1 %v1439_v38 }
  0x1f   :  { %186 = vperm.xlu0 %1479, %v49_v39   ;;  %191 = vperm.xlu1 %1480, %v50_v40  }
  0x21   :  { %1442 = vmatpush3.bf16.msra.mxu0 %v1439_v38  ;;  %1473 = vmatpush3.bf16.msra.mxu1 %v1439_v38 }
  0x23   :  { %196 = vperm.xlu0 %1479, %v51_v41   ;;  %201 = vperm.xlu1 %1480, %v52_v42  }
  0x24   :  { %10 = vsyncpa [#allocation3], 0  ;;  %1321 = vmatmul.mubr.f32.vlgmr.msra.gmra.mrb[0].mxu0 %v91_v43  ;;  %1360 = vmatmul.mubr.f32.vlgmr.msra.gmra.mrb[0].mxu1 %v117_v44  ;;  %v53_v47 = vld [vmem:[%s2031_s4 + $0x80] sm:$0xff]  ;;  %v54_v48 = vld [vmem:[%s2031_s4 + $0x88] sm:$0xff]  ;;  %vm601_vm0 = vcmask 1040384   ;;  %vm603_vm1 = vcmask 1041408  }
  0x25   :  { %1323 = vmatprep.mubr.f32.mxu0 %v92_v45  ;;  %1362 = vmatprep.mubr.f32.mxu1 %v118_v46  ;;  %v93_v49 = vld [vmem:[%s2028_s1 + $0x18] sm:$0xff]  ;;  %v119_v50 = vld [vmem:[%s2028_s1 + $0xe8] sm:$0xff]  ;;  %v94_v51 = vld [vmem:[%s2028_s1 + $0x20] sm:$0xff]  ;;  %vm605_vm2 = vcmask 1042432   ;;  %vm607_vm3 = vcmask 1043456   ;;  %vm609_vm4 = vcmask 1044480  }
  0x26   :  { %v120_v52 = vld [vmem:[%s2028_s1 + $0xf0] sm:$0xff]  ;;  %v56_v54 = vld [vmem:[%s2031_s4 + $0x98] sm:$0xff]  ;;  %v95_v55 = vld [vmem:[%s2028_s1 + $0x28] sm:$0xff]  ;;  %vm611_vm5 = vcmask 1045504   ;;  %vm613_vm6 = vcmask 1046528   ;;  %vm775_vm7 = vcmask 130048  }
  0x27   :  { %206 = vperm.xlu0 %1479, %v53_v47   ;;  %211 = vperm.xlu1 %1480, %v54_v48   ;;  %v55_v53 = vld [vmem:[%s2031_s4 + $0x90] sm:$0xff]  ;;  %v121_v56 = vld [vmem:[%s2028_s1 + $0xf8] sm:$0xff]  ;;  %v122_v58 = vld [vmem:[%s2028_s1 + $0x100] sm:$0xff]  ;;  %vm889_vm8 = vcmask 261120   ;;  %vm1519_vm9 = vmmov 0  }
  0x28   :  { %1324 = vmatmul.mubr.f32.gmra.mrb[2].mxu0 %v93_v49  ;;  %1363 = vmatmul.mubr.f32.gmra.mrb[2].mxu1 %v119_v50  ;;  %v96_v57 = vld [vmem:[%s2028_s1 + $0x30] sm:$0xff]  ;;  %v57_v59 = vld [vmem:[%s2031_s4 + $0xa0] sm:$0xff]  ;;  %v58_v60 = vld [vmem:[%s2031_s4 + $0xa8] sm:$0xff] }
  0x29   :  { %1326 = vmatprep.mubr.f32.mxu0 %v94_v51  ;;  %1365 = vmatprep.mubr.f32.mxu1 %v120_v52  ;;  %v97_v61 = vld [vmem:[%s2028_s1 + $0x38] sm:$0xff]  ;;  %v123_v62 = vld [vmem:[%s2028_s1 + $0x108] sm:$0xff]  ;;  %v98_v63 = vld [vmem:[%s2028_s1 + $0x40] sm:$0xff] }
  0x2a   :  { %v59_v2 = vld [vmem:[%s2031_s4 + $0xb0] sm:$0xff]  ;;  %v60_v3 = vld [vmem:[%s2031_s4 + $0xb8] sm:$0xff]  ;;  %v99_v4 = vld [vmem:[%s2028_s1 + $0x48] sm:$0xff] }
  0x2b   :  { %216 = vperm.xlu0 %1479, %v55_v53   ;;  %221 = vperm.xlu1 %1480, %v56_v54   ;;  %v100_v5 = vld [vmem:[%s2028_s1 + $0x50] sm:$0xff]  ;;  %v61_v6 = vld [vmem:[%s2031_s4 + $0xc0] sm:$0xff]  ;;  %v62_v7 = vld [vmem:[%s2031_s4 + $0xc8] sm:$0xff] }
  0x2c   :  { %1327 = vmatmul.mubr.f32.gmra.mrb[4].mxu0 %v95_v55  ;;  %1366 = vmatmul.mubr.f32.gmra.mrb[4].mxu1 %v121_v56  ;;  %v101_v8 = vld [vmem:[%s2028_s1 + $0x58] sm:$0xff]  ;;  %v102_v9 = vld [vmem:[%s2028_s1 + $0x60] sm:$0xff]  ;;  %v63_v10 = vld [vmem:[%s2031_s4 + $0xd0] sm:$0xff] }
  0x2d   :  { %1329 = vmatprep.mubr.f32.mxu0 %v96_v57  ;;  %1368 = vmatprep.mubr.f32.mxu1 %v122_v58  ;;  %v64_v11 = vld [vmem:[%s2031_s4 + $0xd8] sm:$0xff]  ;;  %v103_v12 = vld [vmem:[%s2028_s1 + $0x68] sm:$0xff]  ;;  %v104_v13 = vld [vmem:[%s2028_s1 + $0x70] sm:$0xff] }
  0x2e   :  { %v65_v14 = vld [vmem:[%s2031_s4 + $0xe0] sm:$0xff]  ;;  %v66_v15 = vld [vmem:[%s2031_s4 + $0xe8] sm:$0xff]  ;;  %v105_v16 = vld [vmem:[%s2028_s1 + $0x78] sm:$0xff] }
  0x2f   :  { %226 = vperm.xlu0 %1479, %v57_v59   ;;  %231 = vperm.xlu1 %1480, %v58_v60   ;;  %v106_v17 = vld [vmem:[%s2028_s1 + $0x80] sm:$0xff]  ;;  %v67_v18 = vld [vmem:[%s2031_s4 + $0xf0] sm:$0xff]  ;;  %v68_v19 = vld [vmem:[%s2031_s4 + $0xf8] sm:$0xff] }
  0x30   :  { %1330 = vmatmul.mubr.f32.gmra.mrb[6].mxu0 %v97_v61  ;;  %1369 = vmatmul.mubr.f32.gmra.mrb[6].mxu1 %v123_v62  ;;  %v107_v20 = vld [vmem:[%s2028_s1 + $0x88] sm:$0xff]  ;;  %v108_v21 = vld [vmem:[%s2028_s1 + $0x90] sm:$0xff]  ;;  %v69_v22 = vld [vmem:[%s2031_s4 + $0x100] sm:$0xff] }
  0x31   :  { %1332 = vmatprep.mubr.f32.mxu0 %v98_v63  ;;  %v70_v23 = vld [vmem:[%s2031_s4 + $0x108] sm:$0xff]  ;;  %v109_v24 = vld [vmem:[%s2028_s1 + $0x98] sm:$0xff]  ;;  %v110_v25 = vld [vmem:[%s2028_s1 + $0xa0] sm:$0xff] }
  0x32   :  { %v71_v26 = vld [vmem:[%s2031_s4 + $0x110] sm:$0xff]  ;;  %v72_v27 = vld [vmem:[%s2031_s4 + $0x118] sm:$0xff]  ;;  %v111_v28 = vld [vmem:[%s2028_s1 + $0xa8] sm:$0xff] }
  0x33   :  { %236 = vperm.xlu0 %1479, %v59_v2   ;;  %241 = vperm.xlu1 %1480, %v60_v3   ;;  %v112_v29 = vld [vmem:[%s2028_s1 + $0xb0] sm:$0xff]  ;;  %v73_v30 = vld [vmem:[%s2031_s4 + $0x120] sm:$0xff]  ;;  %v74_v31 = vld [vmem:[%s2031_s4 + $0x128] sm:$0xff] }
  0x34   :  { %1333 = vmatmul.mubr.f32.gmra.mrb[8].mxu0 %v99_v4  ;;  %v113_v32 = vld [vmem:[%s2028_s1 + $0xb8] sm:$0xff]  ;;  %v114_v33 = vld [vmem:[%s2028_s1 + $0xc0] sm:$0xff]  ;;  %v75_v34 = vld [vmem:[%s2031_s4 + $0x130] sm:$0xff] }
  0x35   :  { %1335 = vmatprep.mubr.f32.mxu0 %v100_v5  ;;  %v76_v35 = vld [vmem:[%s2031_s4 + $0x138] sm:$0xff]  ;;  %v115_v36 = vld [vmem:[%s2028_s1 + $0xc8] sm:$0xff]  ;;  %v77_v37 = vld [vmem:[%s2031_s4 + $0x140] sm:$0xff] }
  0x36   :  { %v78_v38 = vld [vmem:[%s2031_s4 + $0x148] sm:$0xff]  ;;  %v79_v39 = vld [vmem:[%s2031_s4 + $0x150] sm:$0xff]  ;;  %v80_v40 = vld [vmem:[%s2031_s4 + $0x158] sm:$0xff] }
  0x37   :  { %246 = vperm.xlu0 %1479, %v61_v6   ;;  %251 = vperm.xlu1 %1480, %v62_v7   ;;  %v81_v41 = vld [vmem:[%s2031_s4 + $0x160] sm:$0xff]  ;;  %v82_v42 = vld [vmem:[%s2031_s4 + $0x168] sm:$0xff]  ;;  %v83_v43 = vld [vmem:[%s2031_s4 + $0x170] sm:$0xff] }
  0x38   :  { %1336 = vmatmul.mubr.f32.gmra.mrb[10].mxu0 %v101_v8  ;;  %v84_v44 = vld [vmem:[%s2031_s4 + $0x178] sm:$0xff]  ;;  %v85_v45 = vld [vmem:[%s2031_s4 + $0x180] sm:$0xff]  ;;  %v86_v46 = vld [vmem:[%s2031_s4 + $0x188] sm:$0xff] }
  0x39   :  { %1338 = vmatprep.mubr.f32.mxu0 %v102_v9  ;;  %v87_v47 = vld [vmem:[%s2031_s4 + $0x190] sm:$0xff]  ;;  %v88_v48 = vld [vmem:[%s2031_s4 + $0x198] sm:$0xff]  ;;  %v89_v49 = vld [vmem:[%s2031_s4 + $0x1a0] sm:$0xff] }
  0x3b   :  { %256 = vperm.xlu0 %1479, %v63_v10   ;;  %261 = vperm.xlu1 %1480, %v64_v11  }
  0x3c   :  { %1339 = vmatmul.mubr.f32.gmra.mrb[12].mxu0 %v103_v12 }
  0x3d   :  { %1341 = vmatprep.mubr.f32.mxu0 %v104_v13 }
  0x3f   :  { %266 = vperm.xlu0 %1479, %v65_v14   ;;  %271 = vperm.xlu1 %1480, %v66_v15  }
  0x40   :  { %1342 = vmatmul.mubr.f32.gmra.mrb[14].mxu0 %v105_v16 }
  0x41   :  { %1344 = vmatprep.mubr.f32.mxu0 %v106_v17 }
  0x43   :  { %276 = vperm.xlu0 %1479, %v67_v18   ;;  %281 = vperm.xlu1 %1480, %v68_v19  }
  0x44   :  { %1345 = vmatmul.mubr.f32.gmra.mrb[16].mxu0 %v107_v20 }
  0x45   :  { %1347 = vmatprep.mubr.f32.mxu0 %v108_v21 }
  0x47   :  { %286 = vperm.xlu0 %1479, %v69_v22   ;;  %291 = vperm.xlu1 %1480, %v70_v23  }
  0x48   :  { %1348 = vmatmul.mubr.f32.gmra.mrb[18].mxu0 %v109_v24 }
  0x49   :  { %1350 = vmatprep.mubr.f32.mxu0 %v110_v25 }
  0x4b   :  { %724 = vperm.xlu0 %1479, %v71_v26   ;;  %729 = vperm.xlu1 %1480, %v72_v27  }
  0x4c   :  { %1351 = vmatmul.mubr.f32.gmra.mrb[20].mxu0 %v111_v28 }
  0x4d   :  { %1353 = vmatprep.mubr.f32.mxu0 %v112_v29 }
  0x4f   :  { %736 = vperm.xlu0 %1479, %v73_v30   ;;  %741 = vperm.xlu1 %1480, %v74_v31  }
  0x50   :  { %1354 = vmatmul.mubr.f32.gmra.mrb[22].mxu0 %v113_v32 }
  0x51   :  { %1356 = vmatprep.mubr.f32.mxu0 %v114_v33 }
  0x53   :  { %757 = vperm.xlu0 %1479, %v75_v34   ;;  %762 = vperm.xlu1 %1480, %v76_v35  }
  0x54   :  { %1357 = vmatmul.mubr.f32.gmra.mrb[24].mxu0 %v115_v36 }
  0x57   :  { %767 = vperm.xlu0 %1479, %v77_v37   ;;  %772 = vperm.xlu1 %1480, %v78_v38  }
  0x5b   :  { %881 = vperm.xlu0 %1479, %v79_v39   ;;  %886 = vperm.xlu1 %1480, %v80_v40  }
  0x5f   :  { %999 = vperm.xlu0 %1479, %v81_v41   ;;  %1004 = vperm.xlu1 %1480, %v82_v42  }
  0x63   :  { %1011 = vperm.xlu0 %1479, %v83_v43   ;;  %1016 = vperm.xlu1 %1480, %v84_v44  }
  0x67   :  { %1023 = vperm.xlu0 %1479, %v85_v45   ;;  %1028 = vperm.xlu1 %1480, %v86_v46  }
  0x6b   :  { %1033 = vperm.xlu0 %1479, %v87_v47   ;;  %1038 = vperm.xlu1 %1480, %v88_v48  }
  0x6f   :  { %1043 = vperm.xlu0 %1479, %v89_v49  }
  0x86   :  { %v127_v50 = vpop.permute.xlu0 %126  ;;  %v137_v51 = vpop.permute.xlu1 %136 }
  0x8a   :  { %v132_v52 = vpop.permute.xlu0 %131  ;;  %v142_v53 = vpop.permute.xlu1 %141 }
  0x8e   :  { %v147_v54 = vpop.permute.xlu0 %146  ;;  %v152_v55 = vpop.permute.xlu1 %151 }
  0x92   :  { %v157_v56 = vpop.permute.xlu0 %156  ;;  %v162_v57 = vpop.permute.xlu1 %161 }
  0x96   :  { %v167_v8 = vpop.permute.xlu0 %166  ;;  %v172_v9 = vpop.permute.xlu1 %171 }
  0x9a   :  { %v182_v27 = vpop.permute.xlu1 %181  ;;  %v177_v31 = vpop.permute.xlu0 %176 }
  0x9e   :  { %v192_v44 = vpop.permute.xlu1 %191  ;;  %v187_v49 = vpop.permute.xlu0 %186 }
  0xf7   :  { %v1322_v58 = vpop.f32.mrb[0].mxu0  ;;  %v1867_v59 = vpop.f32.mrb[0].mxu1 }
  0xf8   :  { %v360_v60 = vpop.f32.mrb[1].mxu0  ;;  %v1869_v61 = vpop.f32.mrb[1].mxu1  ;;  %v1873_v2 = vadd.f32 %v1322_v58, %v132_v52 }
  0xf9   :  { %v1877_v6 = vadd.f32 %v360_v60, %v127_v50 }
  0xfb   :  { %v1325_v62 = vpop.f32.mrb[2].mxu0  ;;  %v1871_v63 = vpop.f32.mrb[2].mxu1 }
  0xfc   :  { %v376_v3 = vadd.f32 %v1325_v62, %v142_v53  ;;  %v370_v4 = vpop.f32.mrb[3].mxu0  ;;  %v1875_v5 = vpop.f32.mrb[3].mxu1 }
  0xfd   :  { %v371_v7 = vadd.f32 %v370_v4, %v137_v51 }
  0xfe   :  { %v530_v10 = vmul.f32 %v376_v3, %v1873_v2 }
  0xff   :  { %v529_v11 = vmul.f32 %v371_v7, %v1877_v6  ;;  %v1328_v12 = vpop.f32.mrb[4].mxu0  ;;  %v1881_v13 = vpop.f32.mrb[4].mxu1 }
 0x100   :  { %v386_v14 = vadd.f32 %v1328_v12, %v152_v55  ;;  %v380_v15 = vpop.f32.mrb[5].mxu0  ;;  %v1883_v16 = vpop.f32.mrb[5].mxu1 }
 0x101   :  { %v531_v17 = vadd.f32 %v530_v10, %v529_v11  ;;  %v381_v18 = vadd.f32 %v380_v15, %v147_v54  ;;  %v202_v10 = vpop.permute.xlu1 %201 }
 0x102   :  { %v539_v19 = vmul.f32 %v386_v14, %v1873_v2 }
 0x103   :  { %v532_v20 = vrot.slane %v531_v17, 4  ;;  %v538_v21 = vmul.f32 %v381_v18, %v1877_v6  ;;  %v1331_v22 = vpop.f32.mrb[6].mxu0  ;;  %v1887_v23 = vpop.f32.mrb[6].mxu1 }
 0x104   :  { %v396_v24 = vadd.f32 %v1331_v22, %v162_v57  ;;  %v390_v25 = vpop.f32.mrb[7].mxu0  ;;  %v1889_v26 = vpop.f32.mrb[7].mxu1 }
 0x105   :  { %v533_v28 = vadd.f32 %v532_v20, %v531_v17  ;;  %v540_v29 = vadd.f32 %v539_v19, %v538_v21  ;;  %v391_v30 = vadd.f32 %v390_v25, %v157_v56  ;;  %v197_v17 = vpop.permute.xlu0 %196 }
 0x106   :  { %v548_v32 = vmul.f32 %v396_v24, %v1873_v2 }
 0x107   :  { %v534_v33 = vrot.slane %v533_v28, 2  ;;  %v541_v34 = vrot.slane %v540_v29, 4  ;;  %v547_v35 = vmul.f32 %v391_v30, %v1877_v6  ;;  %v1334_v36 = vpop.f32.mrb[8].mxu0 }
 0x108   :  { %v406_v37 = vadd.f32 %v1334_v36, %v172_v9  ;;  %v400_v38 = vpop.f32.mrb[9].mxu0  ;;  %v212_v36 = vpop.permute.xlu1 %211 }
 0x109   :  { %v535_v39 = vadd.f32 %v534_v33, %v533_v28  ;;  %v542_v40 = vadd.f32 %v541_v34, %v540_v29  ;;  %v549_v41 = vadd.f32 %v548_v32, %v547_v35  ;;  %v401_v42 = vadd.f32 %v400_v38, %v167_v8 }
 0x10a   :  { %v557_v43 = vmul.f32 %v406_v37, %v1873_v2 }
 0x10b   :  { %v543_v45 = vrot.slane %v542_v40, 2  ;;  %v550_v46 = vrot.slane %v549_v41, 4  ;;  %v556_v47 = vmul.f32 %v401_v42, %v1877_v6  ;;  %v1337_v48 = vpop.f32.mrb[10].mxu0  ;;  %v536_v50 = vrot.slane %v535_v39, 1  ;;  %v207_v42 = vpop.permute.xlu0 %206 }
 0x10c   :  { %v416_v51 = vadd.f32 %v1337_v48, %v182_v27  ;;  %v410_v52 = vpop.f32.mrb[11].mxu0 }
 0x10d   :  { %v544_v53 = vadd.f32 %v543_v45, %v542_v40  ;;  %v551_v54 = vadd.f32 %v550_v46, %v549_v41  ;;  %v558_v55 = vadd.f32 %v557_v43, %v556_v47  ;;  %v411_v57 = vadd.f32 %v410_v52, %v177_v31 }
 0x10e   :  { %v566_v56 = vmul.f32 %v416_v51, %v1873_v2  ;;  %v537_v4 = vadd.f32 %v536_v50, %v535_v39 }
 0x10f   :  { %v545_v58 = vrot.slane %v544_v53, 1  ;;  %v552_v60 = vrot.slane %v551_v54, 2  ;;  %v559_v62 = vrot.slane %v558_v55, 4  ;;  %v1340_v3 = vpop.f32.mrb[12].mxu0  ;;  %v565_v7 = vmul.f32 %v411_v57, %v1877_v6 }
 0x110   :  { %v426_v8 = vadd.f32 %v1340_v3, %v192_v44  ;;  %v420_v9 = vpop.f32.mrb[13].mxu0 }
 0x111   :  { %v546_v11 = vadd.f32 %v545_v58, %v544_v53  ;;  %v553_v12 = vadd.f32 %v552_v60, %v551_v54  ;;  %v560_v14 = vadd.f32 %v559_v62, %v558_v55  ;;  %v421_v15 = vadd.f32 %v420_v9, %v187_v49 }
 0x112   :  { %v567_v18 = vadd.f32 %v566_v56, %v565_v7  ;;  %v575_v19 = vmul.f32 %v426_v8, %v1873_v2 }
 0x113   :  { %v602_v20 = vsel %vm601_vm0, %v537_v4, %v546_v11  ;;  %v554_v21 = vrot.slane %v553_v12, 1  ;;  %v561_v22 = vrot.slane %v560_v14, 2  ;;  %v574_v24 = vmul.f32 %v421_v15, %v1877_v6  ;;  %v1343_v25 = vpop.f32.mrb[14].mxu0 }
 0x114   :  { %v568_v27 = vrot.slane %v567_v18, 4  ;;  %v436_v28 = vadd.f32 %v1343_v25, %v202_v10  ;;  %v430_v29 = vpop.f32.mrb[15].mxu0 }
 0x115   :  { %v555_v30 = vadd.f32 %v554_v21, %v553_v12  ;;  %v562_v31 = vadd.f32 %v561_v22, %v560_v14  ;;  %v576_v32 = vadd.f32 %v575_v19, %v574_v24  ;;  %v431_v33 = vadd.f32 %v430_v29, %v197_v17 }
 0x116   :  { %v569_v34 = vadd.f32 %v568_v27, %v567_v18  ;;  %v584_v35 = vmul.f32 %v436_v28, %v1873_v2 }
 0x117   :  { %v604_v37 = vsel %vm603_vm1, %v602_v20, %v555_v30  ;;  %v563_v38 = vrot.slane %v562_v31, 1  ;;  %v577_v39 = vrot.slane %v576_v32, 4  ;;  %v583_v40 = vmul.f32 %v431_v33, %v1877_v6  ;;  %v1346_v41 = vpop.f32.mrb[16].mxu0 }
 0x118   :  { %v570_v43 = vrot.slane %v569_v34, 2  ;;  %v446_v44 = vadd.f32 %v1346_v41, %v212_v36  ;;  %v440_v45 = vpop.f32.mrb[17].mxu0  ;;  %v217_v36 = vpop.permute.xlu0 %216 }
 0x119   :  { %v564_v46 = vadd.f32 %v563_v38, %v562_v31  ;;  %v578_v47 = vadd.f32 %v577_v39, %v576_v32  ;;  %v585_v48 = vadd.f32 %v584_v35, %v583_v40  ;;  %v441_v49 = vadd.f32 %v440_v45, %v207_v42 }
 0x11a   :  { %v571_v50 = vadd.f32 %v570_v43, %v569_v34  ;;  %v593_v51 = vmul.f32 %v446_v44, %v1873_v2  ;;  %v746_v34 = vld [vmem:[%s2029_s2] sm:$0xff] }
 0x11b   :  { %v606_v52 = vsel %vm605_vm2, %v604_v37, %v564_v46  ;;  %v579_v53 = vrot.slane %v578_v47, 2  ;;  %v586_v54 = vrot.slane %v585_v48, 4  ;;  %v592_v55 = vmul.f32 %v441_v49, %v1877_v6  ;;  %v1903_v56 = vpop.f32.mrb[18].mxu0  ;;  %1375 = vmatprep.mubr.msk.f32.mxu1 %vm775_vm7, %v746_v34  ;;  %v222_v37 = vpop.permute.xlu1 %221 }
 0x11c   :  { %v572_v57 = vrot.slane %v571_v50, 1  ;;  %v1905_v58 = vpop.f32.mrb[19].mxu0  ;;  %v227_v41 = vpop.permute.xlu0 %226 }
 0x11d   :  { %v580_v60 = vadd.f32 %v579_v53, %v578_v47  ;;  %v587_v62 = vadd.f32 %v586_v54, %v585_v48  ;;  %v594_v3 = vadd.f32 %v593_v51, %v592_v55 }
 0x11e   :  { %v573_v4 = vadd.f32 %v572_v57, %v571_v50 }
 0x11f   :  { %v581_v7 = vrot.slane %v580_v60, 1  ;;  %v588_v8 = vrot.slane %v587_v62, 2  ;;  %v595_v9 = vrot.slane %v594_v3, 4  ;;  %v1907_v10 = vpop.f32.mrb[20].mxu0  ;;  %v232_v42 = vpop.permute.xlu1 %231 }
 0x120   :  { %v608_v2 = vsel %vm607_vm3, %v606_v52, %v573_v4  ;;  %v1910_v11 = vpop.f32.mrb[21].mxu0  ;;  %v237_v45 = vpop.permute.xlu0 %236  ;;  %v633_v4 = vlaneseq }
 0x121   :  { %v582_v6 = vadd.f32 %v581_v7, %v580_v60  ;;  %v589_v12 = vadd.f32 %v588_v8, %v587_v62  ;;  %v596_v14 = vadd.f32 %v595_v9, %v594_v3 }
 0x122   :  { %v1924_v7 = vshrl.u32 %v633_v4, 7 }
 0x123   :  { %v610_v15 = vsel %vm609_vm4, %v608_v2, %v582_v6  ;;  %v590_v17 = vrot.slane %v589_v12, 1  ;;  %v597_v18 = vrot.slane %v596_v14, 2  ;;  %v1912_v19 = vpop.f32.mrb[22].mxu0  ;;  %v242_v46 = vpop.permute.xlu1 %241 }
 0x124   :  { %v1914_v20 = vpop.f32.mrb[23].mxu0  ;;  %v247_v47 = vpop.permute.xlu0 %246  ;;  %v635_v2 = vsub.s32 0, %v1924_v7  ;;  %v641_v6 = vsub.s32 1, %v1924_v7 }
 0x125   :  { %v591_v21 = vadd.f32 %v590_v17, %v589_v12  ;;  %v598_v22 = vadd.f32 %v597_v18, %v596_v14  ;;  %v649_v12 = vsub.s32 2, %v1924_v7  ;;  %v657_v14 = vsub.s32 3, %v1924_v7 }
 0x126   :  { %v673_v18 = vsub.s32 5, %v1924_v7 }
 0x127   :  { %v612_v24 = vsel %vm611_vm5, %v610_v15, %v591_v21  ;;  %v599_v25 = vrot.slane %v598_v22, 1  ;;  %v1916_v27 = vpop.f32.mrb[24].mxu0  ;;  %v252_v48 = vpop.permute.xlu1 %251  ;;  %v665_v15 = vsub.s32 4, %v1924_v7  ;;  %v681_v21 = vsub.s32 6, %v1924_v7 }
 0x128   :  { %v1918_v28 = vpop.f32.mrb[25].mxu0  ;;  %v257_v52 = vpop.permute.xlu0 %256 }
 0x129   :  { %v600_v29 = vadd.f32 %v599_v25, %v598_v22  ;;  %v689_v22 = vsub.s32 7, %v1924_v7 }
 0x12b   :  { %v614_v30 = vsel %vm613_vm6, %v612_v24, %v600_v29  ;;  %v262_v53 = vpop.permute.xlu1 %261  ;;  %v491_v29 = vadd.f32 %v1869_v61, %v257_v52  ;;  %v466_v61 = vadd.f32 %v1907_v10, %v232_v42 }
 0x12c   :  { %v615_v31 = vmul.f32 0.25, %v614_v30  ;;  %v267_v60 = vpop.permute.xlu0 %266  ;;  %v496_v17 = vadd.f32 %v1867_v59, %v262_v53 }
 0x12e   :  { %v616_v32 = vrot.slane %v615_v31, 4 }
 0x12f   :  { %v272_v62 = vpop.permute.xlu1 %271 }
 0x130   :  { %v617_v33 = vmax.f32 %v615_v31, %v616_v32  ;;  %v277_v8 = vpop.permute.xlu0 %276  ;;  %v506_v30 = vadd.f32 %v1871_v63, %v272_v62  ;;  %v461_v63 = vadd.f32 %v1910_v11, %v227_v41 }
 0x131   :  { %v511_v34 = vadd.f32 %v1883_v16, %v277_v8  ;;  %v481_v16 = vadd.f32 %v1918_v28, %v247_v47 }
 0x132   :  { %v618_v35 = vrot.slane %v617_v33, 2 }
 0x133   :  { %v282_v9 = vpop.permute.xlu1 %281 }
 0x134   :  { %v619_v38 = vmax.f32 %v617_v33, %v618_v35  ;;  %v287_v24 = vpop.permute.xlu0 %286  ;;  %v516_v32 = vadd.f32 %v1881_v13, %v282_v9  ;;  %v471_v13 = vadd.f32 %v1914_v20, %v237_v45 }
 0x135   :  { %v521_v35 = vadd.f32 %v1889_v26, %v287_v24 }
 0x136   :  { %v620_v39 = vrot.slane %v619_v38, 1 }
 0x137   :  { %v292_v25 = vpop.permute.xlu1 %291 }
 0x138   :  { %v621_v40 = vmax.f32 %v619_v38, %v620_v39  ;;  %v526_v59 = vadd.f32 %v1887_v23, %v292_v25  ;;  %v456_v38 = vadd.f32 %v1903_v56, %v222_v37 }
 0x13a   :  { %v622_v43 = vsub.f32 %v615_v31, %v621_v40  ;;  %v501_v31 = vadd.f32 %v1875_v5, %v267_v60  ;;  %v451_v40 = vadd.f32 %v1905_v58, %v217_v36  ;;  %v476_v5 = vadd.f32 %v1912_v19, %v242_v46 }
 0x13c   :  { %v623_v44 = vmul.f32 1.442695, %v622_v43  ;;  %v486_v43 = vadd.f32 %v1916_v27, %v252_v48 }
 0x13e   :  { %1481 = vpow2.f32 %v623_v44 }
 0x148   :  { %v1482_v49 = vpop.eup %1481 }
 0x149   :  { %v625_v50 = vrot.slane %v1482_v49, 4 }
 0x14b   :  { %v626_v51 = vadd.f32 %v1482_v49, %v625_v50 }
 0x14d   :  { %v627_v54 = vrot.slane %v626_v51, 2 }
 0x14f   :  { %v628_v55 = vadd.f32 %v627_v54, %v626_v51 }
 0x151   :  { %v629_v57 = vrot.slane %v628_v55, 1 }
 0x153   :  { %v630_v3 = vadd.f32 %v629_v57, %v628_v55 }
 0x155   :  { %1483 = vrcp.f32 %v630_v3 }
 0x15f   :  { %v1484_v33 = vpop.eup %1483 }
 0x160   :  { %v632_v39 = vmul.f32 %v1484_v33, %v1482_v49 }
 0x162   :  { %v636_v23 = vrot.slane %v632_v39, %v635_v2  ;;  %v642_v26 = vrot.slane %v632_v39, %v641_v6  ;;  %v650_v56 = vrot.slane %v632_v39, %v649_v12  ;;  %v658_v58 = vrot.slane %v632_v39, %v657_v14 }
 0x163   :  { %v666_v10 = vrot.slane %v632_v39, %v665_v15  ;;  %v674_v11 = vrot.slane %v632_v39, %v673_v18  ;;  %v682_v19 = vrot.slane %v632_v39, %v681_v21  ;;  %v690_v20 = vrot.slane %v632_v39, %v689_v22 }
 0x164   :  { %v638_v36 = vmul.f32 %v636_v23, %v456_v38  ;;  %v637_v27 = vmul.f32 %v636_v23, %v451_v40  ;;  %v644_v37 = vmul.f32 %v642_v26, %v466_v61  ;;  %v643_v28 = vmul.f32 %v642_v26, %v461_v63 }
 0x165   :  { %v652_v41 = vmul.f32 %v650_v56, %v476_v5  ;;  %v651_v42 = vmul.f32 %v650_v56, %v471_v13  ;;  %v660_v44 = vmul.f32 %v658_v58, %v486_v43  ;;  %v668_v45 = vmul.f32 %v666_v10, %v496_v17  ;;  %v725_v56 = vpop.permute.xlu0 %724 }
 0x166   :  { %v646_v46 = vadd.f32 %v644_v37, %v638_v36  ;;  %v645_v47 = vadd.f32 %v643_v28, %v637_v27  ;;  %v676_v48 = vmul.f32 %v674_v11, %v506_v30  ;;  %v684_v49 = vmul.f32 %v682_v19, %v516_v32 }
 0x167   :  { %v692_v50 = vmul.f32 %v690_v20, %v526_v59  ;;  %v659_v51 = vmul.f32 %v658_v58, %v481_v16  ;;  %v667_v52 = vmul.f32 %v666_v10, %v491_v29  ;;  %v675_v53 = vmul.f32 %v674_v11, %v501_v31  ;;  %v730_v58 = vpop.permute.xlu1 %729 }
 0x168   :  { %v654_v54 = vadd.f32 %v652_v41, %v646_v46  ;;  %v653_v55 = vadd.f32 %v651_v42, %v645_v47  ;;  %v683_v57 = vmul.f32 %v682_v19, %v511_v34  ;;  %v691_v60 = vmul.f32 %v690_v20, %v521_v35  ;;  %v749_v46 = vld [vmem:[%s2029_s2 + $0x18] sm:$0xff]  ;;  %v877_v47 = vld [vmem:[%s2030_s3] sm:$0xff] }
 0x169   :  { %v737_v27 = vpop.permute.xlu0 %736 }
 0x16a   :  { %v662_v62 = vadd.f32 %v660_v44, %v654_v54  ;;  %v661_v3 = vadd.f32 %v659_v51, %v653_v55  ;;  %v747_v44 = vld [vmem:[%s2029_s2 + $0x8] sm:$0xff] }
 0x16b   :  { %v742_v37 = vpop.permute.xlu1 %741 }
 0x16c   :  { %v670_v4 = vadd.f32 %v668_v45, %v662_v62  ;;  %v669_v8 = vadd.f32 %v667_v52, %v661_v3  ;;  %v748_v45 = vld [vmem:[%s2029_s2 + $0x10] sm:$0xff] }
 0x16e   :  { %v678_v9 = vadd.f32 %v676_v48, %v670_v4  ;;  %v677_v15 = vadd.f32 %v675_v53, %v669_v8 }
 0x16f   :  { %v763_v48 = vpop.permute.xlu1 %762 }
 0x170   :  { %v686_v18 = vadd.f32 %v684_v49, %v678_v9  ;;  %v685_v17 = vadd.f32 %v683_v57, %v677_v15  ;;  %v758_v49 = vpop.permute.xlu0 %757 }
 0x172   :  { %v694_v21 = vadd.f32 %v692_v50, %v686_v18  ;;  %v693_v22 = vadd.f32 %v691_v60, %v685_v17 }
 0x173   :  { %v773_v55 = vpop.permute.xlu1 %772 }
 0x174   :  { %v695_v24 = vadd.f32 %v693_v22, %v1555_v0  ;;  %v696_v25 = vadd.f32 %v694_v21, %v1560_v1  ;;  %v768_v62 = vpop.permute.xlu0 %767  ;;  %v878_v21 = vld [vmem:[%s2030_s3 + $0x8] sm:$0xff]  ;;  %v1518_v22 = vmov 0.0|0.0  }
 0x176   :  { %v697_v29 = vadd.f32 %v696_v25, %v695_v24 }
 0x178   :  { %v698_v30 = vrot.slane %v697_v29, 4 }
 0x17a   :  { %v699_v31 = vadd.f32 %v698_v30, %v697_v29  ;;  %v882_v30 = vpop.permute.xlu0 %881 }
 0x17c   :  { %v700_v32 = vrot.slane %v699_v31, 2 }
 0x17e   :  { %v701_v33 = vadd.f32 %v700_v32, %v699_v31 }
 0x180   :  { %v702_v34 = vrot.slane %v701_v33, 1 }
 0x182   :  { %v703_v59 = vadd.f32 %v702_v34, %v701_v33 }
 0x184   :  { %v705_v35 = vmul.f32 0.0625, %v703_v59 }
 0x186   :  { %v706_v38 = vsub.f32 %v695_v24, %v705_v35  ;;  %v707_v39 = vsub.f32 %v696_v25, %v705_v35  ;;  %v1520_v24 = vmov 0.0   ;;  %v887_v25 = vpop.permute.xlu1 %886 }
 0x188   :  { %v708_v40 = vmul.f32 %v706_v38, %v706_v38  ;;  %v709_v61 = vmul.f32 %v707_v39, %v707_v39 }
 0x18a   :  { %v710_v63 = vadd.f32 %v709_v61, %v708_v40 }
 0x18c   :  { %v711_v5 = vrot.slane %v710_v63, 4 }
 0x18e   :  { %v712_v13 = vadd.f32 %v711_v5, %v710_v63 }
 0x190   :  { %v713_v43 = vrot.slane %v712_v13, 2 }
 0x192   :  { %v714_v16 = vadd.f32 %v713_v43, %v712_v13 }
 0x194   :  { %v715_v0 = vrot.slane %v714_v16, 1 }
 0x196   :  { %v716_v23 = vadd.f32 %v715_v0, %v714_v16 }
 0x198   :  { %v717_v1 = vmul.f32 0.0625, %v716_v23 }
 0x19a   :  { %v718_v26 = vadd.f32 1e-05, %v717_v1 }
 0x19c   :  { %1485 = vrsqrt.f32 %v718_v26 }
 0x1a6   :  { %v1486_v10 = vpop.eup %1485 }
 0x1a7   :  { %v720_v11 = vmul.f32 %v1486_v10, %v706_v38  ;;  %v721_v19 = vmul.f32 %v1486_v10, %v707_v39 }
 0x1a9   :  { %v732_v20 = vmul.f32 %v725_v56, %v720_v11  ;;  %v733_v36 = vmul.f32 %v730_v58, %v721_v19 }
 0x1ab   :  { %v744_v28 = vadd.f32 %v737_v27, %v732_v20  ;;  %v745_v41 = vadd.f32 %v742_v37, %v733_v36  ;;  %v1000_v27 = vpop.permute.xlu0 %999  ;;  %v1005_v37 = vpop.permute.xlu1 %1004 }
 0x1ad   :  { %v1443_v42 = vpack.c.bf16 %v745_v41, %v744_v28 }
 0x1af   :  { %1444 = vmatprep.subr.bf16.mxu1 %v1443_v42 }
 0x1b0   :  { %1446 = vmatpush3.bf16.msra.mxu1 %v1443_v42 }
 0x1b3   :  { %1376 = vmatmul.mubr.msk.f32.vlgmr.msra.gmra.mrb[8].mxu1 %vm775_vm7, %v747_v44 }
 0x1b4   :  { %1378 = vmatprep.mubr.msk.f32.mxu1 %vm775_vm7, %v748_v45 }
 0x1b7   :  { %1379 = vmatmul.mubr.msk.f32.gmra.mrb[10].mxu1 %vm775_vm7, %v749_v46  ;;  %v1012_v46 = vpop.permute.xlu0 %1011 }
 0x1b8   :  { %1389 = vmatprep.mubr.msk.f32.mxu1 %vm889_vm8, %v877_v47  ;;  %v1017_v47 = vpop.permute.xlu1 %1016 }
 0x286   :  { %v1377_v50 = vpop.f32.mrb[8].mxu1 }
 0x287   :  { %v860_v51 = vadd.f32 %v1377_v50, %v763_v48  ;;  %v854_v52 = vpop.f32.mrb[9].mxu1 }
 0x288   :  { %v855_v53 = vadd.f32 %v854_v52, %v758_v49  ;;  %v751_v52 = vld [vmem:[%s2029_s2 + $0x28] sm:$0xff] }
 0x289   :  { %v874_v54 = vmax.f32 %v860_v51, 0.0  ;;  %v750_v51 = vld [vmem:[%s2029_s2 + $0x20] sm:$0xff] }
 0x28a   :  { %v873_v57 = vmax.f32 %v855_v53, 0.0  ;;  %v1380_v60 = vpop.f32.mrb[10].mxu1  ;;  %v752_v53 = vld [vmem:[%s2029_s2 + $0x30] sm:$0xff] }
 0x28b   :  { %v870_v3 = vadd.f32 %v1380_v60, %v773_v55  ;;  %v864_v4 = vpop.f32.mrb[11].mxu1  ;;  %v754_v55 = vld [vmem:[%s2029_s2 + $0x40] sm:$0xff] }
 0x28c   :  { %v1447_v8 = vpack.c.bf16 %v874_v54, %v873_v57  ;;  %v865_v9 = vadd.f32 %v864_v4, %v768_v62  ;;  %v753_v54 = vld [vmem:[%s2029_s2 + $0x38] sm:$0xff]  ;;  %v1024_v57 = vpop.permute.xlu0 %1023  ;;  %s1521_s2 = smov [#allocation2]  }
 0x28d   :  { %v876_v15 = vmax.f32 %v870_v3, 0.0  ;;  %s1200_s10 = sshll.u32 %s1521_s2, 4  ;;  %s1201_s10 = int_to_ptr.vmem [resolvable:$true] %s1200_s10 }
 0x28e   :  { %v875_v18 = vmax.f32 %v865_v9, 0.0  ;;  %1448 = vmatprep.subr.bf16.mxu1 %v1447_v8  ;;  %s1493_s11 = scalar_lea.vmem %s1201_s10, 128  ;;  %p1498_p1 = scmp.lt.s32.totalorder %s1201_s10, %s1201_s10 }
 0x28f   :  { %1450 = vmatpush3.bf16.msra.mxu1 %v1447_v8  ;;  %p1494_p0 = scmp.ne.s32.totalorder %s1201_s10, %s1493_s11  ;;  %p1499_p2 = scmp.lt.s32.totalorder %s1493_s11, %s1493_s11 }
 0x290   :  { %v1451_v17 = vpack.c.bf16 %v876_v15, %v875_v18 }
 0x291   :  { %p1500_p3 = por %p1499_p2, %p1498_p1 }
 0x292   :  { %1452 = vmatprep.subr.bf16.mxu1 %v1451_v17 }
 0x293   :  { %1454 = vmatpush3.bf16.msra.mxu1 %v1451_v17  ;;  %p1501_p4 = pnand %p1500_p3, %p1494_p0 }
 0x294   :  { %1455 = vmatprep.subr.bf16.mxu1 %v1518_v22 }
 0x296   :  { %1390 = vmatmul.mubr.msk.f32.vlgmr.msra.gmra.mrb[12].mxu1 %vm889_vm8, %v878_v21 }
 0x297   :  { %1396 = vmatprep.mubr.msk.f32.mxu1 %vm1519_vm9, %v1520_v24 }
 0x369   :  { %v1391_v29 = vpop.f32.mrb[12].mxu1 }
 0x36a   :  { %v968_v31 = vadd.f32 %v1391_v29, %v887_v25  ;;  %v962_v32 = vpop.f32.mrb[13].mxu1 }
 0x36b   :  { %v963_v33 = vadd.f32 %v962_v32, %v882_v30 }
 0x36c   :  { %v972_v34 = vadd.f32 %v968_v31, %v745_v41 }
 0x36d   :  { %v971_v59 = vadd.f32 %v963_v33, %v744_v28 }
 0x36f   :  { %v973_v35 = vadd.f32 %v972_v34, %v971_v59 }
 0x371   :  { %v974_v38 = vrot.slane %v973_v35, 4 }
 0x373   :  { %v975_v39 = vadd.f32 %v974_v38, %v973_v35 }
 0x375   :  { %v976_v40 = vrot.slane %v975_v39, 2 }
 0x377   :  { %v977_v61 = vadd.f32 %v976_v40, %v975_v39 }
 0x379   :  { %v978_v63 = vrot.slane %v977_v61, 1 }
 0x37b   :  { %v979_v5 = vadd.f32 %v978_v63, %v977_v61 }
 0x37d   :  { %v980_v13 = vmul.f32 0.0625, %v979_v5 }
 0x37f   :  { %v981_v43 = vsub.f32 %v971_v59, %v980_v13  ;;  %v982_v16 = vsub.f32 %v972_v34, %v980_v13 }
 0x381   :  { %v983_v0 = vmul.f32 %v981_v43, %v981_v43  ;;  %v984_v23 = vmul.f32 %v982_v16, %v982_v16 }
 0x383   :  { %v985_v1 = vadd.f32 %v984_v23, %v983_v0 }
 0x385   :  { %v986_v26 = vrot.slane %v985_v1, 4 }
 0x387   :  { %v987_v56 = vadd.f32 %v986_v26, %v985_v1 }
 0x389   :  { %v988_v58 = vrot.slane %v987_v56, 2 }
 0x38b   :  { %v989_v10 = vadd.f32 %v988_v58, %v987_v56 }
 0x38d   :  { %v990_v11 = vrot.slane %v989_v10, 1 }
 0x38f   :  { %v991_v19 = vadd.f32 %v990_v11, %v989_v10 }
 0x391   :  { %v992_v20 = vmul.f32 0.0625, %v991_v19 }
 0x393   :  { %v993_v36 = vadd.f32 1e-05, %v992_v20 }
 0x395   :  { %1487 = vrsqrt.f32 %v993_v36 }
 0x39f   :  { %v1488_v28 = vpop.eup %1487 }
 0x3a0   :  { %v995_v41 = vmul.f32 %v1488_v28, %v981_v43  ;;  %v996_v42 = vmul.f32 %v1488_v28, %v982_v16  ;;  %v1029_v43 = vpop.permute.xlu1 %1028  ;;  %v1034_v16 = vpop.permute.xlu0 %1033 }
 0x3a2   :  { %v1007_v44 = vmul.f32 %v1000_v27, %v995_v41  ;;  %v1008_v45 = vmul.f32 %v1005_v37, %v996_v42 }
 0x3a4   :  { %v1019_v48 = vadd.f32 %v1012_v46, %v1007_v44  ;;  %v1020_v49 = vadd.f32 %v1017_v47, %v1008_v45  ;;  %v1039_v23 = vpop.permute.xlu1 %1038  ;;  %v1044_v1 = vpop.permute.xlu0 %1043 }
 0x3a6   :  { %v1456_v50 = vpack.c.bf16 %v1020_v49, %v1019_v48 }
 0x3a8   :  { %1457 = vmatpush3.bf16.msra.mxu1 %v1456_v50 }
 0x3ab   :  { %1397 = vmatmul.mubr.msk.f32.vlgmr.msra.gmra.mrb[14].mxu1 %vm775_vm7, %v750_v51 }
 0x3ac   :  { %1399 = vmatprep.mubr.msk.f32.mxu1 %vm1519_vm9, %v1520_v24 }
 0x3af   :  { %1400 = vmatmul.mubr.msk.f32.gmra.mrb[16].mxu1 %vm775_vm7, %v751_v52 }
 0x3b0   :  { %1402 = vmatprep.mubr.msk.f32.mxu1 %vm1519_vm9, %v1520_v24 }
 0x3b3   :  { %1403 = vmatmul.mubr.msk.f32.gmra.mrb[18].mxu1 %vm775_vm7, %v752_v53 }
 0x3b4   :  { %1405 = vmatprep.mubr.msk.f32.mxu1 %vm1519_vm9, %v1520_v24 }
 0x3b7   :  { %1406 = vmatmul.mubr.msk.f32.gmra.mrb[20].mxu1 %vm775_vm7, %v753_v54 }
 0x3b8   :  { %1408 = vmatprep.mubr.msk.f32.mxu1 %vm1519_vm9, %v1520_v24 }
 0x3bb   :  { %1409 = vmatmul.mubr.msk.f32.gmra.mrb[22].mxu1 %vm775_vm7, %v754_v55 }
 0x47e   :  { %v1127_v60 = vpop.f32.mrb[14].mxu1 }
 0x47f   :  { %v1128_v62 = vadd.f32 %v1127_v60, %v1024_v57  ;;  %v1398_v3 = vpop.f32.mrb[15].mxu1 }
 0x481   :  { %v1151_v4 = vsel %vm607_vm3, %v1128_v62, -inf }
 0x482   :  { %v1152_v8 = vrot.slane %v1151_v4, 4  ;;  %v1132_v9 = vpop.f32.mrb[16].mxu1 }
 0x483   :  { %v1401_v15 = vpop.f32.mrb[17].mxu1  ;;  %v1133_v56 = vadd.f32 %v1132_v9, %v1029_v43 }
 0x484   :  { %v1153_v18 = vmax.f32 %v1151_v4, %v1152_v8 }
 0x486   :  { %v1154_v17 = vrot.slane %v1153_v18, 2  ;;  %v1137_v21 = vpop.f32.mrb[18].mxu1 }
 0x487   :  { %v1404_v22 = vpop.f32.mrb[19].mxu1  ;;  %v1138_v58 = vadd.f32 %v1137_v21, %v1034_v16 }
 0x488   :  { %v1155_v24 = vmax.f32 %v1153_v18, %v1154_v17 }
 0x48a   :  { %v1156_v25 = vrot.slane %v1155_v24, 1  ;;  %v1142_v29 = vpop.f32.mrb[20].mxu1 }
 0x48b   :  { %v1407_v30 = vpop.f32.mrb[21].mxu1  ;;  %v1143_v10 = vadd.f32 %v1142_v29, %v1039_v23 }
 0x48c   :  { %v1157_v31 = vmax.f32 %v1155_v24, %v1156_v25 }
 0x48e   :  { %v1158_v32 = vsub.f32 %v1128_v62, %v1157_v31  ;;  %v1147_v33 = vpop.f32.mrb[22].mxu1 }
 0x48f   :  { %v1410_v34 = vpop.f32.mrb[23].mxu1  ;;  %v1148_v11 = vadd.f32 %v1147_v33, %v1044_v1 }
 0x490   :  { %v1159_v59 = vmul.f32 1.442695, %v1158_v32 }
 0x492   :  { %1489 = vpow2.f32 %v1159_v59 }
 0x49c   :  { %v1490_v35 = vpop.eup %1489 }
 0x49d   :  { %v1161_v38 = vsel %vm607_vm3, %v1490_v35, 0.0 }
 0x49e   :  { %v1162_v39 = vrot.slane %v1161_v38, 4 }
 0x4a0   :  { %v1163_v40 = vadd.f32 %v1162_v39, %v1161_v38 }
 0x4a2   :  { %v1164_v61 = vrot.slane %v1163_v40, 2 }
 0x4a4   :  { %v1165_v63 = vadd.f32 %v1164_v61, %v1163_v40 }
 0x4a6   :  { %v1166_v5 = vrot.slane %v1165_v63, 1 }
 0x4a8   :  { %v1167_v13 = vadd.f32 %v1166_v5, %v1165_v63 }
 0x4aa   :  { %1491 = vrcp.f32 %v1167_v13 }
 0x4b4   :  { %v1492_v0 = vpop.eup %1491 }
 0x4b5   :  { %v1169_v26 = vmul.f32 %v1492_v0, %v1490_v35 }
 0x4b7   :  { %v1173_v19 = vrot.slane %v1169_v26, %v635_v2  ;;  %v1178_v20 = vrot.slane %v1169_v26, %v641_v6  ;;  %v1184_v36 = vrot.slane %v1169_v26, %v649_v12  ;;  %v1190_v27 = vrot.slane %v1169_v26, %v657_v14 }
 0x4b9   :  { %v1174_v37 = vmul.f32 %v1173_v19, %v1133_v56  ;;  %v1179_v28 = vmul.f32 %v1178_v20, %v1138_v58  ;;  %v1185_v41 = vmul.f32 %v1184_v36, %v1143_v10  ;;  %v1191_v42 = vmul.f32 %v1190_v27, %v1148_v11 }
 0x4bb   :  { %v1180_v44 = vadd.f32 %v1179_v28, %v1174_v37 }
 0x4bd   :  { %v1186_v45 = vadd.f32 %v1185_v41, %v1180_v44 }
 0x4bf   :  { %v1192_v46 = vadd.f32 %v1191_v42, %v1186_v45 }
 0x4c1   :  { %1193 = vst [vmem:[#allocation2] sm:$0xff] %v1192_v46 }
 0x4c2   :  { %1504 = shalt.err (!%p1501_p4)
}
 0x4c3   :  { %s1505_s14 = scalar_lea.hbm %s2032_s5, 128 }
 0x4c4   :  { %p1506_p5 = scmp.ne.s32.totalorder %s2032_s5, %s1505_s14  ;;  %p1509_p6 = scmp.lt.u32.totalorder %s1505_s14, %s2032_s5 }
 0x4c6   :  { %p1511_p7 = pnand %p1509_p6, %p1506_p5 }
 0x4c8   :  { %1514 = shalt.err (!%p1511_p7)
}
 0x4c9   :  { %1203 = dma.vmem_to_hbm [thread:$0]  %s1201_s10, 128, %s2032_s5, [#allocation3]  }
 0x4ca   :  { %1515 = dma.done.wait [#allocation3], 128  }
 0x4cb   :  { %1516 = vsyncadd [#allocation3], 4294967168 }
 0x4cc   :  { %1207 = vsyncpa [#allocation3], 1 }

</bundles_post_ra>
